<compile_context>
chip_gen: v7x
topology: tpu7x:2x2x1
jax: 0.10.0
libtpu: 0.0.40
codegen_flags: <defaults>
</compile_context>

<pallas_src>
import functools

import jax
import jax.numpy as jnp
from jax.experimental import pallas as pl
from jax.experimental.pallas import tpu as pltpu

H1 = 1026
H2 = 512
OUT = 2

LANE = 128
SUBLANE = 8


def _round_up(x, m):
    return ((x + m - 1) // m) * m


def _cdiv(a, b):
    return (a + b - 1) // b


H1P = _round_up(H1, LANE)   # 1152: dense (8,128) tiles for layer-1 out / layer-2 K
OUTP = LANE                 # 128: lane-dense output stores; wrapper slices [:, :2]


# ----------------------------------------------------------------------------
# Chip-dependent defaults
# ----------------------------------------------------------------------------
def _device_kind():
    try:
        return jax.devices()[0].device_kind.lower()
    except Exception:
        return ""


def default_tanh_dtype(kind=None):
    """bf16 tanh on v6e/v7x (EUP has a bf16 path); f32 on v5e / unknown chips."""
    kind = _device_kind() if kind is None else kind
    if ("v6" in kind) or ("v7" in kind) or ("trillium" in kind):
        return jnp.bfloat16
    return jnp.float32


def _cores_per_chip(kind=None):
    kind = _device_kind() if kind is None else kind
    return 2 if "v7" in kind else 1


def _choose_tiling(batch, tm_max, cores_per_chip):
    """Balanced batch tiling.

    Returns (padded_batch, tm, n_sub) with:
      * tm a multiple of 8 (sublane constraint),
      * balanced tiles (last tile not mostly padding),
      * >= cores_per_chip grid steps when that still leaves >=128 rows/tile,
      * n_sub in-kernel row sub-tiles (sub_m = tm // n_sub, multiple of 8) so
        the MXU work of the next sub-tile overlaps the EUP tanh of the current.
    """
    tm_max = max(SUBLANE, _round_up(int(tm_max), SUBLANE))
    bs = _round_up(max(int(batch), 1), SUBLANE)
    num_tiles = _cdiv(bs, tm_max)
    if cores_per_chip > 1 and bs // cores_per_chip >= 128:
        num_tiles = _round_up(max(num_tiles, cores_per_chip), cores_per_chip)
    tm = _round_up(_cdiv(bs, num_tiles), SUBLANE)
    bp = num_tiles * tm

    n_sub = 1
    for cand in (4, 2):
        if tm % (cand * SUBLANE) == 0 and tm // cand >= 64:
            n_sub = cand
            break
    return bp, tm, n_sub


# ----------------------------------------------------------------------------
# Kernel
# ----------------------------------------------------------------------------
def _mlp_kernel(x_ref, w1_ref, b1_ref, w2_ref, b2_ref, w3_ref, b3_ref, o_ref,
                *, n_sub, sub_m, tanh_dtype):
    # Weights/biases stay resident in VMEM (constant index_map); read once.
    w1 = w1_ref[...]
    b1 = b1_ref[...]
    w2 = w2_ref[...]
    b2 = b2_ref[...]
    w3 = w3_ref[...]
    b3 = b3_ref[...]

    # Fully unrolled over row sub-tiles (static slice starts => free slices).
    # Independent sub-tiles let the scheduler issue sub-tile k+1's MXU matmuls
    # while sub-tile k's tanh is still draining through the EUP.
    for s in range(n_sub):
        r = s * sub_m
        xs = x_ref[pl.ds(r, sub_m), :].astype(jnp.bfloat16)
        # Layer 1: bf16 x bf16 matmul with f32 accumulation.
        h1 = jnp.dot(xs, w1, preferred_element_type=jnp.float32) + b1
        h1 = jnp.tanh(h1.astype(tanh_dtype)).astype(jnp.bfloat16)
        # Layer 2 (padded hidden cols are exactly zero: tanh(0)=0, W2 pad rows = 0).
        h2 = jnp.dot(h1, w2, preferred_element_type=jnp.float32) + b2
        h2 = jnp.tanh(h2.astype(tanh_dtype)).astype(jnp.bfloat16)
        # Layer 3 into a lane-padded (sub_m, 128) slab (unmasked vst).
        o = jnp.dot(h2, w3, preferred_element_type=jnp.float32) + b3
        o_ref[pl.ds(r, sub_m), :] = o.astype(o_ref.dtype)


# ----------------------------------------------------------------------------
# Params
# ----------------------------------------------------------------------------
def prepare_params(params):
    """Pad + cast params (W: (in,out), b: (1,out)) for the kernel.

    Padding is exact: extra W1 cols / b1 entries are zero (padded hidden units
    are tanh(0)=0) and the matching W2 rows are zero; W3/b3 pad to 128 output
    lanes with zeros.  Weights are bf16 (half the HBM->VMEM bytes), biases f32.
    """
    w1, b1, w2, b2, w3, b3 = params
    D = w1.shape[0]

    w1p = jnp.zeros((D, H1P), jnp.bfloat16).at[:, :H1].set(w1.astype(jnp.bfloat16))
    b1p = jnp.zeros((1, H1P), jnp.float32).at[:, :H1].set(b1.astype(jnp.float32).reshape(1, H1))
    w2p = jnp.zeros((H1P, H2), jnp.bfloat16).at[:H1, :].set(w2.astype(jnp.bfloat16))
    b2p = b2.astype(jnp.float32).reshape(1, H2)
    w3p = jnp.zeros((H2, OUTP), jnp.bfloat16).at[:, :OUT].set(w3.astype(jnp.bfloat16))
    b3p = jnp.zeros((1, OUTP), jnp.float32).at[:, :OUT].set(b3.astype(jnp.float32).reshape(1, OUT))
    return (w1p, b1p, w2p, b2p, w3p, b3p)


# ----------------------------------------------------------------------------
# Forward
# ----------------------------------------------------------------------------
def sysid_forward(x, params, padded_params=None, *, tm_max=512,
                  tanh_dtype=None, cores_per_chip=None):
    """x: (B, step_limit, 10) or (B, input_size). Returns (B, 2) float32."""
    D = params[0].shape[0]
    if padded_params is None:
        padded_params = prepare_params(params)
    w1p, b1p, w2p, b2p, w3p, b3p = padded_params

    if tanh_dtype is None:
        tanh_dtype = default_tanh_dtype()
    if cores_per_chip is None:
        cores_per_chip = _cores_per_chip()

    B = x.shape[0]
    x2d = x.reshape(B, -1)                        # torch.flatten(x, start_dim=1)
    assert x2d.shape[1] == D

    Bp, tm, n_sub = _choose_tiling(B, tm_max, cores_per_chip)
    if Bp != B:                                    # batch-pad only when needed
        x2d = jnp.zeros((Bp, D), x2d.dtype).at[:B].set(x2d)

    kernel = functools.partial(_mlp_kernel, n_sub=n_sub, sub_m=tm // n_sub,
                               tanh_dtype=tanh_dtype)
    const = lambda shape: pl.BlockSpec(shape, lambda i: (0, 0))  # resident weights

    out = pl.pallas_call(
        kernel,
        out_shape=jax.ShapeDtypeStruct((Bp, OUTP), jnp.float32),
        grid_spec=pltpu.PrefetchScalarGridSpec(
            num_scalar_prefetch=0,
            grid=(Bp // tm,),
            in_specs=[
                # D equals the full last dim, so the (8,128) rule is satisfied
                # without any feature-dim padding; bf16 cast happens in-kernel.
                pl.BlockSpec((tm, D), lambda i: (i, 0)),
                const(w1p.shape), const(b1p.shape),
                const(w2p.shape), const(b2p.shape),
                const(w3p.shape), const(b3p.shape),
            ],
            out_specs=pl.BlockSpec((tm, OUTP), lambda i: (i, 0)),
        ),
        compiler_params=pltpu.CompilerParams(
            # Batch tiles are independent -> shard grid steps across both TCs on v7x.
            dimension_semantics=("parallel",),
        ),
    )(x2d, w1p, b1p, w2p, b2p, w3p, b3p)

    return out[:B, :OUT]


# ----------------------------------------------------------------------------
# Init + references
# ----------------------------------------------------------------------------
def init_params(key, input_size):
    """Deterministic init matching nn.Linear's U(-1/sqrt(fan_in), 1/sqrt(fan_in))."""
    dims = [(input_size, H1), (H1, H2), (H2, OUT)]
    params = []
    for fan_in, fan_out in dims:
        key, kw, kb = jax.random.split(key, 3)
        bound = 1.0 / jnp.sqrt(jnp.float32(fan_in))
        w = jax.random.uniform(kw, (fan_in, fan_out), jnp.float32, -bound, bound)
        b = jax.random.uniform(kb, (1, fan_out), jnp.float32, -bound, bound)
        params += [w, b]
    return tuple(params)


def sysid_reference_f32(x, params):
    """Pure f32 reference with the original module semantics."""
    w1, b1, w2, b2, w3, b3 = params
    x2d = x.reshape(x.shape[0], -1).astype(jnp.float32)
    h1 = jnp.tanh(x2d @ w1 + b1)
    h2 = jnp.tanh(h1 @ w2 + b2)
    return h2 @ w3 + b3


def sysid_reference_matched(x, params, tanh_dtype):
    """Pure-JAX reference on the same precision path as the kernel
    (bf16 matmul inputs, f32 accumulation, tanh in `tanh_dtype`)."""
    w1, b1, w2, b2, w3, b3 = params
    x2d = x.reshape(x.shape[0], -1).astype(jnp.bfloat16)
    h1 = jnp.dot(x2d, w1.astype(jnp.bfloat16),
                 preferred_element_type=jnp.float32) + b1
    h1 = jnp.tanh(h1.astype(tanh_dtype)).astype(jnp.bfloat16)
    h2 = jnp.dot(h1, w2.astype(jnp.bfloat16),
                 preferred_element_type=jnp.float32) + b2
    h2 = jnp.tanh(h2.astype(tanh_dtype)).astype(jnp.bfloat16)
    return (jnp.dot(h2, w3.astype(jnp.bfloat16),
                    preferred_element_type=jnp.float32) + b3).astype(jnp.float32)


# ----------------------------------------------------------------------------
# Self-test
# ----------------------------------------------------------------------------
if __name__ == "__main__":
    step_limit = 8
    input_size = step_limit * 10

    key = jax.random.PRNGKey(0)
    params = init_params(jax.random.PRNGKey(0), input_size)
    padded = prepare_params(params)          # pad/cast once; reuse across calls

    td = default_tanh_dtype()
    # matched-path tolerance: tighter when tanh is f32, looser when bf16
    m_tol = 3e-3 if td == jnp.float32 else 2e-2

    # --- run 1: spec-shaped small batch (B=2), un-flattened input -------------
    key, kx = jax.random.split(key)
    x = jax.random.normal(kx, (2, step_limit, 10), jnp.float32)
    out = jax.block_until_ready(sysid_forward(x, params, padded, tanh_dtype=td))
    assert out.shape == (2, 2)
    assert jnp.allclose(out, sysid_reference_matched(x, params, td),
                        atol=m_tol, rtol=m_tol), "mismatch vs matched-precision reference (B=2)"
    assert jnp.allclose(out, sysid_reference_f32(x, params),
                        atol=5e-2, rtol=5e-2), "mismatch vs f32 reference (B=2)"

    # --- run 2: non-multiple batch -> exercises batch padding, balanced tiles
    #            and in-kernel sub-tiling ------------------------------------
    key, kx2 = jax.random.split(key)
    x2 = jax.random.normal(kx2, (300, step_limit, 10), jnp.float32)
    out2 = jax.block_until_ready(sysid_forward(x2, params, padded, tanh_dtype=td))
    assert out2.shape == (300, 2)
    assert jnp.allclose(out2, sysid_reference_matched(x2, params, td),
                        atol=m_tol, rtol=m_tol), "mismatch vs matched-precision reference (B=300)"
    assert jnp.allclose(out2, sysid_reference_f32(x2, params),
                        atol=5e-2, rtol=5e-2), "mismatch vs f32 reference (B=300)"

    print("KERNEL_OK")
</pallas_src>

<mosaic_0001>
module attributes {stable_mosaic.version = 11 : i64} {
  func.func @_mlp_kernel(%arg0: i32, %arg1: memref<8x80xf32, #tpu.memory_space<vmem>>, %arg2: memref<80x1152xbf16, #tpu.memory_space<vmem>>, %arg3: memref<1x1152xf32, #tpu.memory_space<vmem>>, %arg4: memref<1152x512xbf16, #tpu.memory_space<vmem>>, %arg5: memref<1x512xf32, #tpu.memory_space<vmem>>, %arg6: memref<512x128xbf16, #tpu.memory_space<vmem>>, %arg7: memref<1x128xf32, #tpu.memory_space<vmem>>, %arg8: memref<8x128xf32, #tpu.memory_space<vmem>>) attributes {dimension_semantics = [#tpu.dimension_semantics<parallel>], iteration_bounds = array<i64: 1>, scalar_prefetch = 0 : i64, scratch_operands = 0 : i64, tpu.core_type = #tpu.core_type<tc>, window_params = [{transform_indices = @transform_0, window_bounds = array<i64: 8, 80>}, {pipeline_mode = #tpu.pipeline_mode<synchronous>, transform_indices = @transform_1, window_bounds = array<i64: 80, 1152>}, {pipeline_mode = #tpu.pipeline_mode<synchronous>, transform_indices = @transform_2, window_bounds = array<i64: 1, 1152>}, {pipeline_mode = #tpu.pipeline_mode<synchronous>, transform_indices = @transform_3, window_bounds = array<i64: 1152, 512>}, {pipeline_mode = #tpu.pipeline_mode<synchronous>, transform_indices = @transform_4, window_bounds = array<i64: 1, 512>}, {pipeline_mode = #tpu.pipeline_mode<synchronous>, transform_indices = @transform_5, window_bounds = array<i64: 512, 128>}, {pipeline_mode = #tpu.pipeline_mode<synchronous>, transform_indices = @transform_6, window_bounds = array<i64: 1, 128>}, {transform_indices = @transform_7, window_bounds = array<i64: 8, 128>}]} {
    %c0 = arith.constant 0 : index
    %c0_0 = arith.constant 0 : index
    %0 = vector.load %arg2[%c0, %c0_0] : memref<80x1152xbf16, #tpu.memory_space<vmem>>, vector<80x1152xbf16>
    %c0_1 = arith.constant 0 : index
    %c0_2 = arith.constant 0 : index
    %1 = vector.load %arg3[%c0_1, %c0_2] : memref<1x1152xf32, #tpu.memory_space<vmem>>, vector<1x1152xf32>
    %c0_3 = arith.constant 0 : index
    %c0_4 = arith.constant 0 : index
    %2 = vector.load %arg4[%c0_3, %c0_4] : memref<1152x512xbf16, #tpu.memory_space<vmem>>, vector<1152x512xbf16>
    %c0_5 = arith.constant 0 : index
    %c0_6 = arith.constant 0 : index
    %3 = vector.load %arg5[%c0_5, %c0_6] : memref<1x512xf32, #tpu.memory_space<vmem>>, vector<1x512xf32>
    %c0_7 = arith.constant 0 : index
    %c0_8 = arith.constant 0 : index
    %4 = vector.load %arg6[%c0_7, %c0_8] : memref<512x128xbf16, #tpu.memory_space<vmem>>, vector<512x128xbf16>
    %c0_9 = arith.constant 0 : index
    %c0_10 = arith.constant 0 : index
    %5 = vector.load %arg7[%c0_9, %c0_10] : memref<1x128xf32, #tpu.memory_space<vmem>>, vector<1x128xf32>
    %c0_11 = arith.constant 0 : index
    %c0_12 = arith.constant 0 : index
    %6 = vector.load %arg1[%c0_11, %c0_12] : memref<8x80xf32, #tpu.memory_space<vmem>>, vector<8x80xf32>
    %7 = arith.truncf %6 : vector<8x80xf32> to vector<8x80xbf16>
    %cst = arith.constant dense<0.000000e+00> : vector<8x1152xf32>
    %8 = tpu.matmul %7, %0, %cst {dimension_numbers = #tpu.dot_dimension_numbers<[1], [0], [0], [1], [0, 0, 1, 1], [], []>} : vector<8x80xbf16>, vector<80x1152xbf16>, vector<8x1152xf32> -> vector<8x1152xf32>
    %9 = vector.broadcast %1 : vector<1x1152xf32> to vector<8x1152xf32>
    %10 = arith.addf %8, %9 : vector<8x1152xf32>
    %11 = math.tanh %10 : vector<8x1152xf32>
    %12 = arith.truncf %11 : vector<8x1152xf32> to vector<8x1152xbf16>
    %cst_13 = arith.constant dense<0.000000e+00> : vector<8x512xf32>
    %13 = tpu.matmul %12, %2, %cst_13 {dimension_numbers = #tpu.dot_dimension_numbers<[1], [0], [0], [1], [0, 0, 1, 1], [], []>} : vector<8x1152xbf16>, vector<1152x512xbf16>, vector<8x512xf32> -> vector<8x512xf32>
    %14 = vector.broadcast %3 : vector<1x512xf32> to vector<8x512xf32>
    %15 = arith.addf %13, %14 : vector<8x512xf32>
    %16 = math.tanh %15 : vector<8x512xf32>
    %17 = arith.truncf %16 : vector<8x512xf32> to vector<8x512xbf16>
    %cst_14 = arith.constant dense<0.000000e+00> : vector<8x128xf32>
    %18 = tpu.matmul %17, %4, %cst_14 {dimension_numbers = #tpu.dot_dimension_numbers<[1], [0], [0], [1], [0, 0, 1, 1], [], []>} : vector<8x512xbf16>, vector<512x128xbf16>, vector<8x128xf32> -> vector<8x128xf32>
    %19 = vector.broadcast %5 : vector<1x128xf32> to vector<8x128xf32>
    %20 = arith.addf %18, %19 : vector<8x128xf32>
    %c0_15 = arith.constant 0 : index
    %c0_16 = arith.constant 0 : index
    %21 = vector.load %arg8[%c0_15, %c0_16] : memref<8x128xf32, #tpu.memory_space<vmem>>, vector<8x128xf32>
    tpu.vector_store %arg8[%c0_15, %c0_16], %20 {strides = array<i32>} : memref<8x128xf32, #tpu.memory_space<vmem>>, vector<8x128xf32>,
    return
  }
  func.func @transform_0(%arg0: i32) -> (i32, i32) {
    %c0_i32 = arith.constant 0 : i32
    %c0_i32_0 = arith.constant 0 : i32
    return %arg0, %c0_i32 : i32, i32
  }
  func.func @transform_1(%arg0: i32) -> (i32, i32) {
    %c0_i32 = arith.constant 0 : i32
    %c0_i32_0 = arith.constant 0 : i32
    %c0_i32_1 = arith.constant 0 : i32
    return %c0_i32, %c0_i32_0 : i32, i32
  }
  func.func @transform_2(%arg0: i32) -> (i32, i32) {
    %c0_i32 = arith.constant 0 : i32
    %c0_i32_0 = arith.constant 0 : i32
    %c0_i32_1 = arith.constant 0 : i32
    return %c0_i32, %c0_i32_0 : i32, i32
  }
  func.func @transform_3(%arg0: i32) -> (i32, i32) {
    %c0_i32 = arith.constant 0 : i32
    %c0_i32_0 = arith.constant 0 : i32
    %c0_i32_1 = arith.constant 0 : i32
    return %c0_i32, %c0_i32_0 : i32, i32
  }
  func.func @transform_4(%arg0: i32) -> (i32, i32) {
    %c0_i32 = arith.constant 0 : i32
    %c0_i32_0 = arith.constant 0 : i32
    %c0_i32_1 = arith.constant 0 : i32
    return %c0_i32, %c0_i32_0 : i32, i32
  }
  func.func @transform_5(%arg0: i32) -> (i32, i32) {
    %c0_i32 = arith.constant 0 : i32
    %c0_i32_0 = arith.constant 0 : i32
    %c0_i32_1 = arith.constant 0 : i32
    return %c0_i32, %c0_i32_0 : i32, i32
  }
  func.func @transform_6(%arg0: i32) -> (i32, i32) {
    %c0_i32 = arith.constant 0 : i32
    %c0_i32_0 = arith.constant 0 : i32
    %c0_i32_1 = arith.constant 0 : i32
    return %c0_i32, %c0_i32_0 : i32, i32
  }
  func.func @transform_7(%arg0: i32) -> (i32, i32) {
    %c0_i32 = arith.constant 0 : i32
    %c0_i32_0 = arith.constant 0 : i32
    return %arg0, %c0_i32 : i32, i32
  }
}

</mosaic_0001>

<bundles_post_ra>
// kernel: tpu_custom_call.1
= control target key start
LH: loop header
LB: loop body
LE: loop exit
PB: predicated region body
PF: predicated region fallthrough
CT: control target
= control target key end

     0   :  { %12 = vsyncpa [#allocation3], 0  ;;  %s4657_s0 = inlined_call_operand.hbm [shape: f32[8,80], index: 0, kind: input, shape index: {}]   ;;  %s4658_s1 = inlined_call_operand.hbm [shape: bf16[80,1152], index: 1, kind: input, shape index: {}]   ;;  %s4659_s2 = inlined_call_operand.hbm [shape: f32[1,1152], index: 2, kind: input, shape index: {}]   ;;  %s4660_s3 = inlined_call_operand.hbm [shape: bf16[1152,512], index: 3, kind: input, shape index: {}]   ;;  %s4661_s4 = inlined_call_operand.hbm [shape: f32[1,512], index: 4, kind: input, shape index: {}]   ;;  %s4662_s5 = inlined_call_operand.hbm [shape: bf16[512,128], index: 5, kind: input, shape index: {}]   ;;  %s4663_s6 = inlined_call_operand.hbm [shape: f32[1,128], index: 6, kind: input, shape index: {}]   ;;  %s4664_s7 = inlined_call_operand.hbm [shape: f32[8,128], index: 7, kind: output, shape index: {}]  }
   0x1   :  { %13 = vsyncpa [#allocation6], 0 }
   0x2   :  { %14 = vsyncpa [#allocation9], 0 }
   0x3   :  { %15 = vsyncpa [#allocation12], 0 }
   0x4   :  { %16 = vsyncpa [#allocation4], 0  ;;  %s4432_s24 = smov [#allocation5]   ;;  %s4246_s28 = scalar_lea.hbm %s4658_s1, 5760 }
   0x5   :  { %s32_s25 = sshll.u32 %s4432_s24, 4  ;;  %p4247_p0 = scmp.ne.s32.totalorder %s4658_s1, %s4246_s28  ;;  %s33_s25 = int_to_ptr.vmem [resolvable:$true] %s32_s25 }
   0x6   :  { %p4250_p1 = scmp.lt.u32.totalorder %s4246_s28, %s4658_s1 }
   0x8   :  { %p4252_p2 = pnand %p4250_p1, %p4247_p0 }
   0xa   :  { %4255 = shalt.err (!%p4252_p2)
}
   0xb   :  { %s4256_s10 = scalar_lea.vmem %s33_s25, 5760  ;;  %p4261_p4 = scmp.lt.s32.totalorder %s33_s25, %s33_s25 }
   0xc   :  { %p4257_p3 = scmp.ne.s32.totalorder %s33_s25, %s4256_s10  ;;  %p4262_p5 = scmp.lt.s32.totalorder %s4256_s10, %s4256_s10 }
   0xe   :  { %p4263_p6 = por %p4262_p5, %p4261_p4 }
  0x10   :  { %p4264_p7 = pnand %p4263_p6, %p4257_p3 }
  0x12   :  { %4267 = shalt.err (!%p4264_p7)
}
  0x13   :  { %s4433_s11 = smov 576   ;;  %s4434_s12 = smov 36  }
  0x14   :  { %38 = dma.hbm_to_vmem [thread:$0]  %s4658_s1, 5760, %s33_s25, [#allocation6], %s4433_s11, %s4433_s11, %s4434_s12  }
  0x15   :  { %s4435_s15 = smov [#allocation8]   ;;  %s4268_s19 = scalar_lea.hbm %s4660_s3, 36864 }
  0x16   :  { %s54_s16 = sshll.u32 %s4435_s15, 4  ;;  %p4269_p8 = scmp.ne.s32.totalorder %s4660_s3, %s4268_s19  ;;  %s55_s16 = int_to_ptr.vmem [resolvable:$true] %s54_s16 }
  0x17   :  { %p4272_p9 = scmp.lt.u32.totalorder %s4268_s19, %s4660_s3 }
  0x19   :  { %p4274_p10 = pnand %p4272_p9, %p4269_p8 }
  0x1b   :  { %4277 = shalt.err (!%p4274_p10)
}
  0x1c   :  { %s4278_s24 = scalar_lea.vmem %s55_s16, 36864  ;;  %p4283_p12 = scmp.lt.s32.totalorder %s55_s16, %s55_s16 }
  0x1d   :  { %p4279_p11 = scmp.ne.s32.totalorder %s55_s16, %s4278_s24  ;;  %p4284_p13 = scmp.lt.s32.totalorder %s4278_s24, %s4278_s24 }
  0x1f   :  { %p4285_p0 = por %p4284_p13, %p4283_p12 }
  0x21   :  { %p4286_p1 = pnand %p4285_p0, %p4279_p11 }
  0x23   :  { %4289 = shalt.err (!%p4286_p1)
}
  0x24   :  { %s4436_s1 = smov 256   ;;  %s4437_s25 = smov 16  }
  0x25   :  { %60 = dma.hbm_to_vmem [thread:$0]  %s4660_s3, 36864, %s55_s16, [#allocation9], %s4436_s1, %s4436_s1, %s4437_s25  }
  0x26   :  { %s4438_s28 = smov [#allocation11]   ;;  %s4290_s9 = scalar_lea.hbm %s4662_s5, 4096 }
  0x27   :  { %s76_s29 = sshll.u32 %s4438_s28, 4  ;;  %p4291_p2 = scmp.ne.s32.totalorder %s4662_s5, %s4290_s9  ;;  %s77_s29 = int_to_ptr.vmem [resolvable:$true] %s76_s29 }
  0x28   :  { %p4294_p3 = scmp.lt.u32.totalorder %s4290_s9, %s4662_s5 }
  0x2a   :  { %p4296_p4 = pnand %p4294_p3, %p4291_p2 }
  0x2c   :  { %4299 = shalt.err (!%p4296_p4)
}
  0x2d   :  { %s4300_s14 = scalar_lea.vmem %s77_s29, 4096  ;;  %p4305_p6 = scmp.lt.s32.totalorder %s77_s29, %s77_s29 }
  0x2e   :  { %p4301_p5 = scmp.ne.s32.totalorder %s77_s29, %s4300_s14  ;;  %p4306_p7 = scmp.lt.s32.totalorder %s4300_s14, %s4300_s14 }
  0x30   :  { %p4307_p8 = por %p4306_p7, %p4305_p6 }
  0x32   :  { %p4308_p9 = pnand %p4307_p8, %p4301_p5 }
  0x34   :  { %4311 = shalt.err (!%p4308_p9)
}
  0x35   :  { %s4439_s3 = smov 64   ;;  %s4440_s15 = smov 4  }
  0x36   :  { %82 = dma.hbm_to_vmem [thread:$0]  %s4662_s5, 4096, %s77_s29, [#allocation12], %s4439_s3, %s4439_s3, %s4440_s15  }
  0x37   :  { %s4441_s18 = smov [#allocation2]   ;;  %s4442_s20 = smov [#allocation7]  }
  0x38   :  { %s23_s19 = sshll.u32 %s4441_s18, 4  ;;  %s45_s21 = sshll.u32 %s4442_s20, 4  ;;  %s24_s19 = int_to_ptr.vmem [resolvable:$true] %s23_s19  ;;  %s46_s21 = int_to_ptr.vmem [resolvable:$true] %s45_s21 }
  0x39   :  { %s4312_s24 = scalar_lea.hbm %s4657_s0, 128 }
  0x3a   :  { %p4313_p10 = scmp.ne.s32.totalorder %s4657_s0, %s4312_s24  ;;  %p4316_p11 = scmp.lt.u32.totalorder %s4312_s24, %s4657_s0 }
  0x3c   :  { %p4318_p12 = pnand %p4316_p11, %p4313_p10 }
  0x3e   :  { %4321 = shalt.err (!%p4318_p12)
}
  0x3f   :  { %s4322_s5 = scalar_lea.vmem %s24_s19, 128  ;;  %p4327_p0 = scmp.lt.s32.totalorder %s24_s19, %s24_s19 }
  0x40   :  { %p4323_p13 = scmp.ne.s32.totalorder %s24_s19, %s4322_s5  ;;  %p4328_p1 = scmp.lt.s32.totalorder %s4322_s5, %s4322_s5 }
  0x42   :  { %p4329_p2 = por %p4328_p1, %p4327_p0 }
  0x44   :  { %p4330_p3 = pnand %p4329_p2, %p4323_p13 }
  0x46   :  { %4333 = shalt.err (!%p4330_p3)
}
  0x47   :  { %26 = dma.hbm_to_vmem [thread:$0]  %s4657_s0, 128, %s24_s19, [#allocation3]  }
  0x48   :  { %s4334_s9 = scalar_lea.hbm %s4659_s2, 144 }
  0x49   :  { %p4335_p4 = scmp.ne.s32.totalorder %s4659_s2, %s4334_s9  ;;  %p4338_p5 = scmp.lt.u32.totalorder %s4334_s9, %s4659_s2 }
  0x4b   :  { %p4340_p6 = pnand %p4338_p5, %p4335_p4 }
  0x4d   :  { %4343 = shalt.err (!%p4340_p6)
}
  0x4e   :  { %s4344_s14 = scalar_lea.vmem %s46_s21, 144  ;;  %s4348_s3 = scalar_lea.vmem %s46_s21, 160 }
  0x4f   :  { %p4345_p7 = scmp.ne.s32.totalorder %s46_s21, %s4344_s14  ;;  %p4349_p8 = scmp.lt.s32.totalorder %s46_s21, %s46_s21 }
  0x50   :  { %p4350_p9 = scmp.lt.s32.totalorder %s4348_s3, %s4344_s14 }
  0x52   :  { %p4351_p10 = por %p4350_p9, %p4349_p8 }
  0x54   :  { %p4352_p11 = pnand %p4351_p10, %p4345_p7 }
  0x56   :  { %4355 = shalt.err (!%p4352_p11)
}
  0x57   :  { %48 = dma.hbm_to_vmem [thread:$0]  %s4659_s2, 144, %s46_s21, [#allocation6]  }
  0x58   :  { %s4443_s16 = smov [#allocation10]   ;;  %s4444_s18 = smov [#allocation13]  }
  0x59   :  { %s67_s17 = sshll.u32 %s4443_s16, 4  ;;  %s89_s19 = sshll.u32 %s4444_s18, 4  ;;  %s68_s17 = int_to_ptr.vmem [resolvable:$true] %s67_s17  ;;  %s90_s19 = int_to_ptr.vmem [resolvable:$true] %s89_s19 }
  0x5a   :  { %s4356_s23 = scalar_lea.hbm %s4661_s4, 64 }
  0x5b   :  { %p4357_p12 = scmp.ne.s32.totalorder %s4661_s4, %s4356_s23  ;;  %p4360_p13 = scmp.lt.u32.totalorder %s4356_s23, %s4661_s4 }
  0x5d   :  { %p4362_p0 = pnand %p4360_p13, %p4357_p12 }
  0x5f   :  { %4365 = shalt.err (!%p4362_p0)
}
  0x60   :  { %s4366_s2 = scalar_lea.vmem %s68_s17, 64  ;;  %p4371_p2 = scmp.lt.s32.totalorder %s68_s17, %s68_s17 }
  0x61   :  { %p4367_p1 = scmp.ne.s32.totalorder %s68_s17, %s4366_s2  ;;  %p4372_p3 = scmp.lt.s32.totalorder %s4366_s2, %s4366_s2 }
  0x63   :  { %p4373_p4 = por %p4372_p3, %p4371_p2 }
  0x65   :  { %p4374_p5 = pnand %p4373_p4, %p4367_p1 }
  0x67   :  { %4377 = shalt.err (!%p4374_p5)
}
  0x68   :  { %70 = dma.hbm_to_vmem [thread:$0]  %s4661_s4, 64, %s68_s17, [#allocation9]  }
  0x69   :  { %s4378_s29 = scalar_lea.hbm %s4663_s6, 16 }
  0x6a   :  { %p4379_p6 = scmp.ne.s32.totalorder %s4663_s6, %s4378_s29  ;;  %p4382_p7 = scmp.lt.u32.totalorder %s4378_s29, %s4663_s6 }
  0x6c   :  { %p4384_p8 = pnand %p4382_p7, %p4379_p6 }
  0x6e   :  { %4387 = shalt.err (!%p4384_p8)
}
  0x6f   :  { %s4388_s11 = scalar_lea.vmem %s90_s19, 16  ;;  %s4392_s12 = scalar_lea.vmem %s90_s19, 32 }
  0x70   :  { %p4389_p9 = scmp.ne.s32.totalorder %s90_s19, %s4388_s11  ;;  %p4393_p10 = scmp.lt.s32.totalorder %s90_s19, %s90_s19 }
  0x71   :  { %p4394_p11 = scmp.lt.s32.totalorder %s4392_s12, %s4388_s11 }
  0x73   :  { %p4395_p12 = por %p4394_p11, %p4393_p10 }
  0x75   :  { %p4396_p13 = pnand %p4395_p12, %p4389_p9 }
  0x77   :  { %4399 = shalt.err (!%p4396_p13)
}
  0x78   :  { %92 = dma.hbm_to_vmem [thread:$0]  %s4663_s6, 16, %s90_s19, [#allocation12]  }
  0x79   :  { %4422 = dma.done.wait [#allocation3], 128  }
  0x7a   :  { %4423 = vsyncadd [#allocation3], 4294967168 }
  0x7b   :  { %4424 = dma.done.wait [#allocation6], 5904  }
  0x7c   :  { %4425 = vsyncadd [#allocation6], 4294961392 }
  0x7d   :  { %4426 = dma.done.wait [#allocation9], 36928  }
  0x7e   :  { %4427 = vsyncadd [#allocation9], 4294930368 }
  0x7f   :  { %4428 = dma.done.wait [#allocation12], 4112  }
  0x80   :  { %4429 = vsyncadd [#allocation12], 4294963184  ;;  %v4445_v0 = vmov 0   ;;  %v3691_v1 = vld [vmem:[#allocation5 + $0x4] ss:$36 sps:$4 sm:$0xff]   ;;  %v521_v16 = vld [vmem:[#allocation2] sm:$0xff] }
  0x81   :  { %836 = vmatprep.mubr.bf16.mxu0 %v4445_v0  ;;  %877 = vmatprep.mubr.bf16.mxu1 %v4445_v0  ;;  %v3693_v2 = vld [vmem:[#allocation5] ss:$36 sps:$4 sm:$0xff]   ;;  %v3694_v3 = vld [vmem:[#allocation5 + $0x4c] ss:$36 sps:$4 sm:$0xff]   ;;  %v3697_v5 = vld [vmem:[#allocation5 + $0x94] ss:$36 sps:$4 sm:$0xff]   ;;  %v4575_v20 = vpack.c.bf16 %v521_v16, %v521_v16 }
  0x82   :  { %804 = vmatprep.subr.bf16.mxu0 %v3691_v1  ;;  %v3696_v4 = vld [vmem:[#allocation5 + $0x48] ss:$36 sps:$4 sm:$0xff]   ;;  %v3699_v6 = vld [vmem:[#allocation5 + $0x90] ss:$36 sps:$4 sm:$0xff]   ;;  %v3700_v7 = vld [vmem:[#allocation5 + $0xdc] ss:$36 sps:$4 sm:$0xff]  }
  0x83   :  { %805 = vmatpush1.bf16.msra.mxu0 %v3693_v2  ;;  %v3706_v8 = vld [vmem:[#allocation5 + $0xc] ss:$36 sps:$4 sm:$0xff]   ;;  %v3709_v10 = vld [vmem:[#allocation5 + $0x54] ss:$36 sps:$4 sm:$0xff]   ;;  %v3712_v13 = vld [vmem:[#allocation5 + $0x9c] ss:$36 sps:$4 sm:$0xff]  }
  0x84   :  { %806 = vmatprep.subr.bf16.mxu0 %v3694_v3  ;;  %v3708_v9 = vld [vmem:[#allocation5 + $0x8] ss:$36 sps:$4 sm:$0xff]   ;;  %845 = vmatprep.subr.bf16.mxu1 %v3706_v8  ;;  %v3702_v11 = vld [vmem:[#allocation5 + $0xd8] ss:$36 sps:$4 sm:$0xff]   ;;  %v3711_v12 = vld [vmem:[#allocation5 + $0x50] ss:$36 sps:$4 sm:$0xff]  }
  0x85   :  { %846 = vmatpush1.bf16.msra.mxu1 %v3708_v9  ;;  %v3703_v14 = vld [vmem:[#allocation5 + $0x124] ss:$36 sps:$4 sm:$0xff]   ;;  %v3714_v17 = vld [vmem:[#allocation5 + $0x98] ss:$36 sps:$4 sm:$0xff]   ;;  %v3718_v22 = vld [vmem:[#allocation5 + $0x12c] ss:$36 sps:$4 sm:$0xff]  }
  0x86   :  { %847 = vmatprep.subr.bf16.mxu1 %v3709_v10  ;;  %v3705_v15 = vld [vmem:[#allocation5 + $0x120] ss:$36 sps:$4 sm:$0xff]   ;;  %v3723_v19 = vld [vmem:[#allocation5 + $0x14] ss:$36 sps:$4 sm:$0xff]   ;;  %vm800_vm0 = vcmask 654336   ;;  %v4446_v43 = vmov 0.0  }
  0x87   :  { %807 = vmatpush1.bf16.msra.mxu0 %v3696_v4  ;;  %v3715_v18 = vld [vmem:[#allocation5 + $0xe4] ss:$36 sps:$4 sm:$0xff]   ;;  %v3721_v23 = vld [vmem:[#allocation5 + $0x10] ss:$36 sps:$4 sm:$0xff]   ;;  %v3726_v24 = vld [vmem:[#allocation5 + $0x5c] ss:$36 sps:$4 sm:$0xff]  }
  0x88   :  { %808 = vmatprep.subr.bf16.mxu0 %v3697_v5  ;;  %v3717_v21 = vld [vmem:[#allocation5 + $0xe0] ss:$36 sps:$4 sm:$0xff]   ;;  %v3720_v25 = vld [vmem:[#allocation5 + $0x128] ss:$36 sps:$4 sm:$0xff]   ;;  %v3724_v26 = vld [vmem:[#allocation5 + $0x58] ss:$36 sps:$4 sm:$0xff]  }
  0x89   :  { %848 = vmatpush1.bf16.msra.mxu1 %v3711_v12  ;;  %v3738_v27 = vld [vmem:[#allocation5 + $0x1c] ss:$36 sps:$4 sm:$0xff]   ;;  %v3729_v28 = vld [vmem:[#allocation5 + $0xa4] ss:$36 sps:$4 sm:$0xff]   ;;  %v3732_v32 = vld [vmem:[#allocation5 + $0xec] ss:$36 sps:$4 sm:$0xff]  }
  0x8a   :  { %849 = vmatprep.subr.bf16.mxu1 %v3712_v13  ;;  %v3727_v29 = vld [vmem:[#allocation5 + $0xa0] ss:$36 sps:$4 sm:$0xff]   ;;  %v3736_v30 = vld [vmem:[#allocation5 + $0x18] ss:$36 sps:$4 sm:$0xff]   ;;  %v3730_v33 = vld [vmem:[#allocation5 + $0xe8] ss:$36 sps:$4 sm:$0xff]  }
  0x8b   :  { %809 = vmatpush1.bf16.msra.mxu0 %v3699_v6  ;;  %v3742_v31 = vld [vmem:[#allocation5 + $0x64] ss:$36 sps:$4 sm:$0xff]   ;;  %v3746_v35 = vld [vmem:[#allocation5 + $0xac] ss:$36 sps:$4 sm:$0xff]   ;;  %v3735_v36 = vld [vmem:[#allocation5 + $0x134] ss:$36 sps:$4 sm:$0xff]  }
  0x8c   :  { %810 = vmatprep.subr.bf16.mxu0 %v3700_v7  ;;  %v3740_v34 = vld [vmem:[#allocation5 + $0x60] ss:$36 sps:$4 sm:$0xff]   ;;  %v3744_v37 = vld [vmem:[#allocation5 + $0xa8] ss:$36 sps:$4 sm:$0xff]   ;;  %v3733_v38 = vld [vmem:[#allocation5 + $0x130] ss:$36 sps:$4 sm:$0xff]  }
  0x8d   :  { %850 = vmatpush1.bf16.msra.mxu1 %v3714_v17  ;;  %v3750_v39 = vld [vmem:[#allocation5 + $0xf4] ss:$36 sps:$4 sm:$0xff]   ;;  %v3739_v41 = vld [vmem:[#allocation5 + $0x20] ss:$36 sps:$4 sm:$0xff]   ;;  %v3743_v45 = vld [vmem:[#allocation5 + $0x68] ss:$36 sps:$4 sm:$0xff]  }
  0x8e   :  { %851 = vmatprep.subr.bf16.mxu1 %v3715_v18  ;;  %v3748_v40 = vld [vmem:[#allocation5 + $0xf0] ss:$36 sps:$4 sm:$0xff]   ;;  %v3754_v42 = vld [vmem:[#allocation5 + $0x13c] ss:$36 sps:$4 sm:$0xff]   ;;  %vm4447_vm1 = vmmov 0   ;;  %s4448_s6 = smov [#allocation14]  }
  0x8f   :  { %811 = vmatpush1.bf16.msra.mxu0 %v3702_v11  ;;  %v3752_v44 = vld [vmem:[#allocation5 + $0x138] ss:$36 sps:$4 sm:$0xff]   ;;  %v3756_v47 = vld [vmem:[#allocation8] ss:$16 sps:$4 sm:$0xff]   ;;  %s3190_s14 = sshll.u32 %s4448_s6, 4  ;;  %s3191_s14 = int_to_ptr.vmem [resolvable:$true] %s3190_s14 }
  0x90   :  { %812 = vmatprep.subr.bf16.mxu0 %v3703_v14  ;;  %v3758_v46 = vld [vmem:[#allocation8 + $0x4] ss:$16 sps:$4 sm:$0xff]   ;;  %v3762_v50 = vld [vmem:[#allocation8 + $0x20] ss:$16 sps:$4 sm:$0xff]   ;;  %v3761_v56 = vld [vmem:[#allocation8 + $0xc] ss:$16 sps:$4 sm:$0xff]   ;;  %p4405_p1 = scmp.lt.s32.totalorder %s3191_s14, %s3191_s14 }
  0x91   :  { %852 = vmatpush1.bf16.msra.mxu1 %v3717_v21  ;;  %v3747_v48 = vld [vmem:[#allocation5 + $0xb0] ss:$36 sps:$4 sm:$0xff]   ;;  %v3751_v51 = vld [vmem:[#allocation5 + $0xf8] ss:$36 sps:$4 sm:$0xff]   ;;  %v3755_v54 = vld [vmem:[#allocation5 + $0x140] ss:$36 sps:$4 sm:$0xff]  }
  0x92   :  { %853 = vmatprep.subr.bf16.mxu1 %v3718_v22  ;;  %v3764_v49 = vld [vmem:[#allocation8 + $0x24] ss:$16 sps:$4 sm:$0xff]   ;;  %v3768_v53 = vld [vmem:[#allocation8 + $0x40] ss:$16 sps:$4 sm:$0xff]   ;;  %v3759_v58 = vld [vmem:[#allocation8 + $0x8] ss:$16 sps:$4 sm:$0xff]  }
  0x93   :  { %813 = vmatpush1.bf16.msra.mxu0 %v3705_v15  ;;  %v3770_v52 = vld [vmem:[#allocation8 + $0x44] ss:$16 sps:$4 sm:$0xff]   ;;  %v3774_v57 = vld [vmem:[#allocation8 + $0x60] ss:$16 sps:$4 sm:$0xff]   ;;  %v3767_v60 = vld [vmem:[#allocation8 + $0x2c] ss:$16 sps:$4 sm:$0xff]  }
  0x94   :  { %886 = vmatprep.subr.bf16.mxu0 %v3723_v19  ;;  %v3776_v55 = vld [vmem:[#allocation8 + $0x64] ss:$16 sps:$4 sm:$0xff]   ;;  %v3765_v61 = vld [vmem:[#allocation8 + $0x28] ss:$16 sps:$4 sm:$0xff]   ;;  %v3780_v62 = vld [vmem:[#allocation8 + $0x80] ss:$16 sps:$4 sm:$0xff]  }
  0x95   :  { %854 = vmatpush1.bf16.msra.mxu1 %v3720_v25  ;;  %v3782_v59 = vld [vmem:[#allocation8 + $0x84] ss:$16 sps:$4 sm:$0xff]   ;;  %v3773_v63 = vld [vmem:[#allocation8 + $0x4c] ss:$16 sps:$4 sm:$0xff]   ;;  %v3786_v2 = vld [vmem:[#allocation8 + $0xa0] ss:$16 sps:$4 sm:$0xff]  }
  0x96   :  { %3248 = vmatmul.mubr.msk.bf16.vlgmr.msra.gmra.mrb[0].mxu0 %vm800_vm0, %v4575_v20  ;;  %927 = vmatprep.subr.bf16.mxu1 %v3738_v27  ;;  %v3788_v1 = vld [vmem:[#allocation8 + $0xa4] ss:$16 sps:$4 sm:$0xff]   ;;  %v3771_v3 = vld [vmem:[#allocation8 + $0x48] ss:$16 sps:$4 sm:$0xff]   ;;  %v3779_v5 = vld [vmem:[#allocation8 + $0x6c] ss:$16 sps:$4 sm:$0xff]  }
  0x97   :  { %887 = vmatpush1.bf16.msra.mxu0 %v3721_v23  ;;  %918 = vmatprep.mubr.bf16.mxu0 %v4445_v0  ;;  %v3794_v4 = vld [vmem:[#allocation8 + $0xc4] ss:$16 sps:$4 sm:$0xff]   ;;  %v3792_v6 = vld [vmem:[#allocation8 + $0xc0] ss:$16 sps:$4 sm:$0xff]   ;;  %v3777_v7 = vld [vmem:[#allocation8 + $0x68] ss:$16 sps:$4 sm:$0xff]  }
  0x98   :  { %888 = vmatprep.subr.bf16.mxu0 %v3726_v24  ;;  %3249 = vmatmul.mubr.msk.bf16.vlgmr.msra.gmra.mrb[0].mxu1 %vm800_vm0, %v4575_v20  ;;  %v3800_v8 = vld [vmem:[#allocation8 + $0xe4] ss:$16 sps:$4 sm:$0xff]   ;;  %v3785_v9 = vld [vmem:[#allocation8 + $0x8c] ss:$16 sps:$4 sm:$0xff]   ;;  %v3798_v10 = vld [vmem:[#allocation8 + $0xe0] ss:$16 sps:$4 sm:$0xff]  }
  0x99   :  { %928 = vmatpush1.bf16.msra.mxu1 %v3736_v30  ;;  %959 = vmatprep.mubr.bf16.mxu1 %v4445_v0  ;;  %v3783_v11 = vld [vmem:[#allocation8 + $0x88] ss:$16 sps:$4 sm:$0xff]   ;;  %v3806_v12 = vld [vmem:[#allocation8 + $0x104] ss:$16 sps:$4 sm:$0xff]   ;;  %v3791_v13 = vld [vmem:[#allocation8 + $0xac] ss:$16 sps:$4 sm:$0xff]  }
  0x9a   :  { %929 = vmatprep.subr.bf16.mxu1 %v3742_v31  ;;  %v3804_v14 = vld [vmem:[#allocation8 + $0x100] ss:$16 sps:$4 sm:$0xff]   ;;  %v3789_v15 = vld [vmem:[#allocation8 + $0xa8] ss:$16 sps:$4 sm:$0xff]   ;;  %v3812_v16 = vld [vmem:[#allocation8 + $0x124] ss:$16 sps:$4 sm:$0xff]  }
  0x9b   :  { %889 = vmatpush1.bf16.msra.mxu0 %v3724_v26  ;;  %v3797_v17 = vld [vmem:[#allocation8 + $0xcc] ss:$16 sps:$4 sm:$0xff]   ;;  %v3810_v18 = vld [vmem:[#allocation8 + $0x120] ss:$16 sps:$4 sm:$0xff]   ;;  %v3795_v19 = vld [vmem:[#allocation8 + $0xc8] ss:$16 sps:$4 sm:$0xff]  }
  0x9c   :  { %890 = vmatprep.subr.bf16.mxu0 %v3729_v28  ;;  %v3803_v21 = vld [vmem:[#allocation8 + $0xec] ss:$16 sps:$4 sm:$0xff]   ;;  %v3816_v22 = vld [vmem:[#allocation8 + $0x140] ss:$16 sps:$4 sm:$0xff]   ;;  %v3801_v23 = vld [vmem:[#allocation8 + $0xe8] ss:$16 sps:$4 sm:$0xff]  }
  0x9d   :  { %930 = vmatpush1.bf16.msra.mxu1 %v3740_v34  ;;  %v3824_v24 = vld [vmem:[#allocation8 + $0x164] ss:$16 sps:$4 sm:$0xff]   ;;  %v3809_v25 = vld [vmem:[#allocation8 + $0x10c] ss:$16 sps:$4 sm:$0xff]   ;;  %v3822_v26 = vld [vmem:[#allocation8 + $0x160] ss:$16 sps:$4 sm:$0xff]  }
  0x9e   :  { %931 = vmatprep.subr.bf16.mxu1 %v3746_v35  ;;  %v3807_v27 = vld [vmem:[#allocation8 + $0x108] ss:$16 sps:$4 sm:$0xff]   ;;  %v3815_v28 = vld [vmem:[#allocation8 + $0x12c] ss:$16 sps:$4 sm:$0xff]   ;;  %v3830_v34 = vld [vmem:[#allocation8 + $0x184] ss:$16 sps:$4 sm:$0xff]  }
  0x9f   :  { %891 = vmatpush1.bf16.msra.mxu0 %v3727_v29  ;;  %v3813_v29 = vld [vmem:[#allocation8 + $0x128] ss:$16 sps:$4 sm:$0xff]   ;;  %v3821_v30 = vld [vmem:[#allocation8 + $0x14c] ss:$16 sps:$4 sm:$0xff]   ;;  %s4400_s3 = scalar_lea.vmem %s3191_s14, 128 }
  0xa0   :  { %892 = vmatprep.subr.bf16.mxu0 %v3732_v32  ;;  %v3819_v31 = vld [vmem:[#allocation8 + $0x148] ss:$16 sps:$4 sm:$0xff]   ;;  %v3827_v32 = vld [vmem:[#allocation8 + $0x16c] ss:$16 sps:$4 sm:$0xff]   ;;  %p4401_p0 = scmp.ne.s32.totalorder %s3191_s14, %s4400_s3  ;;  %p4406_p2 = scmp.lt.s32.totalorder %s4400_s3, %s4400_s3 }
  0xa1   :  { %932 = vmatpush1.bf16.msra.mxu1 %v3744_v37  ;;  %v3833_v35 = vld [vmem:[#allocation8 + $0x18c] ss:$16 sps:$4 sm:$0xff]   ;;  %v3831_v37 = vld [vmem:[#allocation8 + $0x188] ss:$16 sps:$4 sm:$0xff]  }
  0xa2   :  { %933 = vmatprep.subr.bf16.mxu1 %v3750_v39  ;;  %v3839_v39 = vld [vmem:[#allocation8 + $0x1ac] ss:$16 sps:$4 sm:$0xff]   ;;  %p4407_p3 = por %p4406_p2, %p4405_p1 }
  0xa3   :  { %893 = vmatpush1.bf16.msra.mxu0 %v3730_v33  ;;  %v3825_v33 = vld [vmem:[#allocation8 + $0x168] ss:$16 sps:$4 sm:$0xff]  }
  0xa4   :  { %894 = vmatprep.subr.bf16.mxu0 %v3735_v36  ;;  %v3828_v36 = vld [vmem:[#allocation8 + $0x180] ss:$16 sps:$4 sm:$0xff]   ;;  %p4408_p4 = pnand %p4407_p3, %p4401_p0 }
  0xa5   :  { %934 = vmatpush1.bf16.msra.mxu1 %v3748_v40  ;;  %v3834_v40 = vld [vmem:[#allocation8 + $0x1a0] ss:$16 sps:$4 sm:$0xff]  }
  0xa6   :  { %935 = vmatprep.subr.bf16.mxu1 %v3754_v42  ;;  %v3842_v42 = vld [vmem:[#allocation8 + $0x1c4] ss:$16 sps:$4 sm:$0xff]  }
  0xa7   :  { %895 = vmatpush1.bf16.msra.mxu0 %v3733_v38  ;;  %v3836_v38 = vld [vmem:[#allocation8 + $0x1a4] ss:$16 sps:$4 sm:$0xff]  }
  0xa8   :  { %3624 = vmatprep.subr.bf16.mxu0 %v4446_v43 }
  0xa9   :  { %936 = vmatpush1.bf16.msra.mxu1 %v3752_v44  ;;  %v3840_v44 = vld [vmem:[#allocation8 + $0x1c0] ss:$16 sps:$4 sm:$0xff]  }
  0xaa   :  { %3250 = vmatmul.mubr.msk.bf16.vlgmr.msra.gmra.mrb[4].mxu0 %vm800_vm0, %v4575_v20  ;;  %2487 = vmatprep.subr.bf16.mxu1 %v3758_v46  ;;  %v3848_v46 = vld [vmem:[#allocation8 + $0x1e4] ss:$16 sps:$4 sm:$0xff]  }
  0xab   :  { %3625 = vmatpush3.bf16.msra.mxu0 %v3739_v41  ;;  %3634 = vmatprep.mubr.msk.bf16.mxu0 %vm4447_vm1, %v4446_v43  ;;  %v3837_v41 = vld [vmem:[#allocation8 + $0x1a8] ss:$16 sps:$4 sm:$0xff]  }
  0xac   :  { %3626 = vmatprep.subr.bf16.mxu0 %v4446_v43  ;;  %3251 = vmatmul.mubr.msk.bf16.vlgmr.msra.gmra.mrb[4].mxu1 %vm800_vm0, %v4575_v20 }
  0xad   :  { %2488 = vmatpush1.bf16.msra.mxu1 %v3756_v47  ;;  %v3851_v47 = vld [vmem:[#allocation8 + $0x1ec] ss:$16 sps:$4 sm:$0xff]  }
  0xae   :  { %2489 = vmatprep.subr.bf16.mxu1 %v3764_v49  ;;  %v3849_v49 = vld [vmem:[#allocation8 + $0x1e8] ss:$16 sps:$4 sm:$0xff]  }
  0xaf   :  { %3627 = vmatpush3.bf16.msra.mxu0 %v3743_v45  ;;  %v3843_v45 = vld [vmem:[#allocation8 + $0x1c8] ss:$16 sps:$4 sm:$0xff]  }
  0xb0   :  { %3628 = vmatprep.subr.bf16.mxu0 %v4446_v43 }
  0xb1   :  { %2490 = vmatpush1.bf16.msra.mxu1 %v3762_v50  ;;  %v3854_v50 = vld [vmem:[#allocation8 + $0x204] ss:$16 sps:$4 sm:$0xff]  }
  0xb2   :  { %2491 = vmatprep.subr.bf16.mxu1 %v3770_v52  ;;  %v525_v52 = vlaneseq }
  0xb3   :  { %3629 = vmatpush3.bf16.msra.mxu0 %v3747_v48  ;;  %v3846_v48 = vld [vmem:[#allocation8 + $0x1e0] ss:$16 sps:$4 sm:$0xff]  }
  0xb4   :  { %3630 = vmatprep.subr.bf16.mxu0 %v4446_v43 }
  0xb5   :  { %2492 = vmatpush1.bf16.msra.mxu1 %v3768_v53  ;;  %v4589_v53 = vshrl.u32 %v525_v52, 7 }
  0xb6   :  { %2493 = vmatprep.subr.bf16.mxu1 %v3776_v55  ;;  %v4592_v55 = vld [vmem:[#allocation7] sm:$0xff] }
  0xb7   :  { %3631 = vmatpush3.bf16.msra.mxu0 %v3751_v51  ;;  %v3857_v51 = vld [vmem:[#allocation8 + $0x20c] ss:$16 sps:$4 sm:$0xff]  }
  0xb8   :  { %3632 = vmatprep.subr.bf16.mxu0 %v4446_v43  ;;  %v3845_v43 = vld [vmem:[#allocation8 + $0x1cc] ss:$16 sps:$4 sm:$0xff]  }
  0xb9   :  { %2494 = vmatpush1.bf16.msra.mxu1 %v3774_v57 }
  0xba   :  { %2495 = vmatprep.subr.bf16.mxu1 %v3782_v59 }
  0xbb   :  { %3633 = vmatpush3.bf16.msra.mxu0 %v3755_v54  ;;  %v527_v54 = vsub.s32 0, %v4589_v53 }
  0xbc   :  { %2692 = vmatprep.subr.bf16.mxu0 %v3761_v56  ;;  %v531_v56 = vsub.s32 1, %v4589_v53 }
  0xbd   :  { %2496 = vmatpush1.bf16.msra.mxu1 %v3780_v62  ;;  %v528_v57 = vrot.slane %v4592_v55, %v527_v54  ;;  %v539_v62 = vsub.s32 3, %v4589_v53 }
  0xbe   :  { %3635 = vmatmul.mubr.msk.bf16.vlgmr.msra.gmra.mrb[8].mxu0 %vm800_vm0, %v4575_v20  ;;  %2497 = vmatprep.subr.bf16.mxu1 %v3788_v1  ;;  %v3818_v20 = vld [vmem:[#allocation8 + $0x144] ss:$16 sps:$4 sm:$0xff]  }
  0xbf   :  { %2693 = vmatpush1.bf16.msra.mxu0 %v3759_v58  ;;  %v532_v58 = vrot.slane %v4592_v55, %v531_v56 }
  0xc0   :  { %2694 = vmatprep.subr.bf16.mxu0 %v3767_v60 }
  0xc1   :  { %2498 = vmatpush1.bf16.msra.mxu1 %v3786_v2 }
  0xc2   :  { %2499 = vmatprep.subr.bf16.mxu1 %v3794_v4 }
  0xc3   :  { %2695 = vmatpush1.bf16.msra.mxu0 %v3765_v61 }
  0xc4   :  { %2696 = vmatprep.subr.bf16.mxu0 %v3773_v63 }
  0xc5   :  { %2500 = vmatpush1.bf16.msra.mxu1 %v3792_v6 }
  0xc6   :  { %2501 = vmatprep.subr.bf16.mxu1 %v3800_v8 }
  0xc7   :  { %2697 = vmatpush1.bf16.msra.mxu0 %v3771_v3  ;;  %v540_v3 = vrot.slane %v4592_v55, %v539_v62 }
  0xc8   :  { %2698 = vmatprep.subr.bf16.mxu0 %v3779_v5 }
  0xc9   :  { %2502 = vmatpush1.bf16.msra.mxu1 %v3798_v10 }
  0xca   :  { %2503 = vmatprep.subr.bf16.mxu1 %v3806_v12  ;;  %v3852_v12 = vld [vmem:[#allocation8 + $0x200] ss:$16 sps:$4 sm:$0xff]  }
  0xcb   :  { %2699 = vmatpush1.bf16.msra.mxu0 %v3777_v7 }
  0xcc   :  { %2700 = vmatprep.subr.bf16.mxu0 %v3785_v9 }
  0xcd   :  { %2504 = vmatpush1.bf16.msra.mxu1 %v3804_v14 }
  0xce   :  { %2505 = vmatprep.subr.bf16.mxu1 %v3812_v16  ;;  %v3863_v16 = vld [vmem:[#allocation8 + $0x22c] ss:$16 sps:$4 sm:$0xff]  }
  0xcf   :  { %2701 = vmatpush1.bf16.msra.mxu0 %v3783_v11 }
  0xd0   :  { %2702 = vmatprep.subr.bf16.mxu0 %v3791_v13  ;;  %v3855_v13 = vld [vmem:[#allocation8 + $0x208] ss:$16 sps:$4 sm:$0xff]  }
  0xd1   :  { %2506 = vmatpush1.bf16.msra.mxu1 %v3810_v18  ;;  %v3861_v18 = vld [vmem:[#allocation8 + $0x228] ss:$16 sps:$4 sm:$0xff]  }
  0xd2   :  { %2507 = vmatprep.subr.bf16.mxu1 %v3818_v20  ;;  %v3869_v20 = vld [vmem:[#allocation8 + $0x24c] ss:$16 sps:$4 sm:$0xff]  }
  0xd3   :  { %2703 = vmatpush1.bf16.msra.mxu0 %v3789_v15  ;;  %v3860_v15 = vld [vmem:[#allocation8 + $0x224] ss:$16 sps:$4 sm:$0xff]  }
  0xd4   :  { %2704 = vmatprep.subr.bf16.mxu0 %v3797_v17  ;;  %v3858_v17 = vld [vmem:[#allocation8 + $0x220] ss:$16 sps:$4 sm:$0xff]  }
  0xd5   :  { %2508 = vmatpush1.bf16.msra.mxu1 %v3816_v22 }
  0xd6   :  { %2509 = vmatprep.subr.bf16.mxu1 %v3824_v24 }
  0xd7   :  { %2705 = vmatpush1.bf16.msra.mxu0 %v3795_v19  ;;  %v3866_v19 = vld [vmem:[#allocation8 + $0x244] ss:$16 sps:$4 sm:$0xff]  }
  0xd8   :  { %2706 = vmatprep.subr.bf16.mxu0 %v3803_v21 }
  0xd9   :  { %2510 = vmatpush1.bf16.msra.mxu1 %v3822_v26  ;;  %v3864_v26 = vld [vmem:[#allocation8 + $0x240] ss:$16 sps:$4 sm:$0xff]  }
  0xda   :  { %2511 = vmatprep.subr.bf16.mxu1 %v3830_v34  ;;  %v3881_v34 = vld [vmem:[#allocation8 + $0x28c] ss:$16 sps:$4 sm:$0xff]  }
  0xdb   :  { %2707 = vmatpush1.bf16.msra.mxu0 %v3801_v23 }
  0xdc   :  { %2708 = vmatprep.subr.bf16.mxu0 %v3809_v25 }
  0xdd   :  { %2512 = vmatpush1.bf16.msra.mxu1 %v3828_v36  ;;  %v3879_v36 = vld [vmem:[#allocation8 + $0x288] ss:$16 sps:$4 sm:$0xff]  }
  0xde   :  { %2513 = vmatprep.subr.bf16.mxu1 %v3836_v38  ;;  %v3887_v38 = vld [vmem:[#allocation8 + $0x2ac] ss:$16 sps:$4 sm:$0xff]  }
  0xdf   :  { %2709 = vmatpush1.bf16.msra.mxu0 %v3807_v27  ;;  %v3867_v27 = vld [vmem:[#allocation8 + $0x248] ss:$16 sps:$4 sm:$0xff]  }
  0xe0   :  { %2710 = vmatprep.subr.bf16.mxu0 %v3815_v28 }
  0xe1   :  { %2514 = vmatpush1.bf16.msra.mxu1 %v3834_v40  ;;  %v3882_v40 = vld [vmem:[#allocation8 + $0x2a0] ss:$16 sps:$4 sm:$0xff]  }
  0xe2   :  { %2515 = vmatprep.subr.bf16.mxu1 %v3842_v42 }
  0xe3   :  { %2711 = vmatpush1.bf16.msra.mxu0 %v3813_v29  ;;  %v3872_v29 = vld [vmem:[#allocation8 + $0x264] ss:$16 sps:$4 sm:$0xff]  }
  0xe4   :  { %2712 = vmatprep.subr.bf16.mxu0 %v3821_v30  ;;  %v3875_v30 = vld [vmem:[#allocation8 + $0x26c] ss:$16 sps:$4 sm:$0xff]  }
  0xe5   :  { %2516 = vmatpush1.bf16.msra.mxu1 %v3840_v44  ;;  %v3893_v44 = vld [vmem:[#allocation8 + $0x2cc] ss:$16 sps:$4 sm:$0xff]  }
  0xe6   :  { %2517 = vmatprep.subr.bf16.mxu1 %v3848_v46 }
  0xe7   :  { %2713 = vmatpush1.bf16.msra.mxu0 %v3819_v31  ;;  %v3870_v31 = vld [vmem:[#allocation8 + $0x260] ss:$16 sps:$4 sm:$0xff]  }
  0xe8   :  { %2714 = vmatprep.subr.bf16.mxu0 %v3827_v32  ;;  %v3873_v32 = vld [vmem:[#allocation8 + $0x268] ss:$16 sps:$4 sm:$0xff]  }
  0xe9   :  { %2518 = vmatpush1.bf16.msra.mxu1 %v3846_v48  ;;  %v3891_v48 = vld [vmem:[#allocation8 + $0x2c8] ss:$16 sps:$4 sm:$0xff]  }
  0xea   :  { %2528 = vmatprep.subr.bf16.mxu1 %v3854_v50  ;;  %v3899_v50 = vld [vmem:[#allocation8 + $0x2ec] ss:$16 sps:$4 sm:$0xff]  }
  0xeb   :  { %2715 = vmatpush1.bf16.msra.mxu0 %v3825_v33  ;;  %v3878_v33 = vld [vmem:[#allocation8 + $0x284] ss:$16 sps:$4 sm:$0xff]  }
  0xec   :  { %2716 = vmatprep.subr.bf16.mxu0 %v3833_v35  ;;  %v3876_v35 = vld [vmem:[#allocation8 + $0x280] ss:$16 sps:$4 sm:$0xff]  }
  0xef   :  { %2717 = vmatpush1.bf16.msra.mxu0 %v3831_v37  ;;  %v3884_v37 = vld [vmem:[#allocation8 + $0x2a4] ss:$16 sps:$4 sm:$0xff]  }
  0xf0   :  { %2718 = vmatprep.subr.bf16.mxu0 %v3839_v39 }
  0xf3   :  { %2719 = vmatpush1.bf16.msra.mxu0 %v3837_v41  ;;  %v3885_v41 = vld [vmem:[#allocation8 + $0x2a8] ss:$16 sps:$4 sm:$0xff]  }
  0xf4   :  { %2720 = vmatprep.subr.bf16.mxu0 %v3845_v43  ;;  %v3890_v43 = vld [vmem:[#allocation8 + $0x2c4] ss:$16 sps:$4 sm:$0xff]  }
  0xf7   :  { %2721 = vmatpush1.bf16.msra.mxu0 %v3843_v45 }
  0xf8   :  { %2722 = vmatprep.subr.bf16.mxu0 %v3851_v47  ;;  %v3888_v47 = vld [vmem:[#allocation8 + $0x2c0] ss:$16 sps:$4 sm:$0xff]  }
  0xfb   :  { %2723 = vmatpush1.bf16.msra.mxu0 %v3849_v49  ;;  %v3896_v49 = vld [vmem:[#allocation8 + $0x2e4] ss:$16 sps:$4 sm:$0xff]  }
  0xfc   :  { %2733 = vmatprep.subr.bf16.mxu0 %v3857_v51 }
 0x169   :  { %v838_v59 = vpop.f32.mrb[0].mxu0 }
 0x16a   :  { %v839_v60 = vadd.f32 %v838_v59, %v528_v57  ;;  %v840_v61 = vpop.f32.mrb[1].mxu0  ;;  %v3897_v59 = vld [vmem:[#allocation8 + $0x2e8] ss:$16 sps:$4 sm:$0xff]  }
 0x16b   :  { %v841_v63 = vadd.f32 %v840_v61, %v532_v58  ;;  %v842_v1 = vpop.f32.mrb[2].mxu0  ;;  %v4605_v4 = vpop.f32.mrb[0].mxu1  ;;  %v3894_v58 = vld [vmem:[#allocation8 + $0x2e0] ss:$16 sps:$4 sm:$0xff]   ;;  %v3902_v61 = vld [vmem:[#allocation8 + $0x304] ss:$16 sps:$4 sm:$0xff]  }
 0x16c   :  { %4220 = vtanh.f32 %v839_v60  ;;  %v843_v2 = vpop.f32.mrb[3].mxu0  ;;  %v881_v5 = vpop.f32.mrb[1].mxu1  ;;  %v3900_v1 = vld [vmem:[#allocation8 + $0x300] ss:$16 sps:$4 sm:$0xff]  }
 0x16d   :  { %4222 = vtanh.f32 %v841_v63  ;;  %v882_v6 = vadd.f32 %v881_v5, %v540_v3  ;;  %v883_v7 = vpop.f32.mrb[2].mxu1  ;;  %v3905_v63 = vld [vmem:[#allocation8 + $0x30c] ss:$16 sps:$4 sm:$0xff]   ;;  %v3903_v2 = vld [vmem:[#allocation8 + $0x308] ss:$16 sps:$4 sm:$0xff]  }
 0x16e   :  { %v884_v8 = vpop.f32.mrb[3].mxu1  ;;  %v3908_v3 = vld [vmem:[#allocation8 + $0x324] ss:$16 sps:$4 sm:$0xff]   ;;  %v3911_v5 = vld [vmem:[#allocation8 + $0x32c] ss:$16 sps:$4 sm:$0xff]  }
 0x16f   :  { %4224 = vtanh.f32 %v882_v6  ;;  %v3906_v6 = vld [vmem:[#allocation8 + $0x320] ss:$16 sps:$4 sm:$0xff]   ;;  %v3909_v7 = vld [vmem:[#allocation8 + $0x328] ss:$16 sps:$4 sm:$0xff]   ;;  %v3914_v8 = vld [vmem:[#allocation8 + $0x344] ss:$16 sps:$4 sm:$0xff]  }
 0x176   :  { %v4221_v9 = vpop.eup %4220 }
 0x177   :  { %v4223_v10 = vpop.eup %4222  ;;  %v1017_v14 = vpack.c.bf16 %v4221_v9, %v4221_v9  ;;  %v3917_v9 = vld [vmem:[#allocation8 + $0x34c] ss:$16 sps:$4 sm:$0xff]  }
 0x178   :  { %v1018_v11 = vpack.c.bf16 %v4223_v10, %v4223_v10  ;;  %v535_v10 = vsub.s32 2, %v4589_v53 }
 0x179   :  { %v4225_v22 = vpop.eup %4224 }
 0x17a   :  { %2519 = vmatprep.mubr.bf16.mxu1 %v1018_v11  ;;  %2724 = vmatprep.mubr.bf16.mxu0 %v1018_v11  ;;  %v1020_v24 = vpack.c.bf16 %v4225_v22, %v4225_v22  ;;  %v3912_v11 = vld [vmem:[#allocation8 + $0x340] ss:$16 sps:$4 sm:$0xff]  }
 0x17b   :  { %2520 = vmatmul.mubr.bf16.vlgmr.msra.gmra.mrb[8].mxu1 %v1017_v14  ;;  %2725 = vmatmul.mubr.bf16.vlgmr.msra.gmra.mrb[12].mxu0 %v1017_v14  ;;  %v3923_v14 = vld [vmem:[#allocation8 + $0x36c] ss:$16 sps:$4 sm:$0xff]  }
 0x17c   :  { %2529 = vmatpush1.bf16.msra.mxu1 %v3852_v12  ;;  %2734 = vmatpush1.bf16.msra.mxu0 %v3855_v13  ;;  %v3915_v12 = vld [vmem:[#allocation8 + $0x348] ss:$16 sps:$4 sm:$0xff]   ;;  %v3920_v13 = vld [vmem:[#allocation8 + $0x364] ss:$16 sps:$4 sm:$0xff]  }
 0x17d   :  { %2530 = vmatprep.subr.bf16.mxu1 %v3860_v15  ;;  %2735 = vmatprep.subr.bf16.mxu0 %v3863_v16  ;;  %v4607_v21 = vpop.f32.mrb[4].mxu0  ;;  %v547_v15 = vsub.s32 5, %v4589_v53  ;;  %v536_v16 = vrot.slane %v4592_v55, %v535_v10 }
 0x17e   :  { %v4609_v23 = vpop.f32.mrb[5].mxu0  ;;  %2560 = vmatprep.mubr.bf16.mxu1 %v1020_v24  ;;  %2765 = vmatprep.mubr.bf16.mxu0 %v1020_v24 }
 0x17f   :  { %v924_v25 = vpop.f32.mrb[6].mxu0  ;;  %v4611_v39 = vpop.f32.mrb[4].mxu1  ;;  %v548_v22 = vrot.slane %v4592_v55, %v547_v15  ;;  %v880_v24 = vadd.f32 %v4605_v4, %v536_v16  ;;  %v3936_v4 = vld [vmem:[#allocation8 + $0x3c0] ss:$16 sps:$4 sm:$0xff]   ;;  %v3987_v16 = vld [vmem:[#allocation8 + $0x4c8] ss:$16 sps:$4 sm:$0xff]  }
 0x180   :  { %2531 = vmatpush1.bf16.msra.mxu1 %v3858_v17  ;;  %2736 = vmatpush1.bf16.msra.mxu0 %v3861_v18  ;;  %v925_v28 = vpop.f32.mrb[7].mxu0  ;;  %v4613_v42 = vpop.f32.mrb[5].mxu1  ;;  %v3918_v17 = vld [vmem:[#allocation8 + $0x360] ss:$16 sps:$4 sm:$0xff]   ;;  %v3921_v18 = vld [vmem:[#allocation8 + $0x368] ss:$16 sps:$4 sm:$0xff]  }
 0x181   :  { %2532 = vmatprep.subr.bf16.mxu1 %v3866_v19  ;;  %2737 = vmatprep.subr.bf16.mxu0 %v3869_v20  ;;  %v965_v45 = vpop.f32.mrb[6].mxu1  ;;  %v3926_v19 = vld [vmem:[#allocation8 + $0x384] ss:$16 sps:$4 sm:$0xff]   ;;  %v3929_v20 = vld [vmem:[#allocation8 + $0x38c] ss:$16 sps:$4 sm:$0xff]   ;;  %4226 = vtanh.f32 %v880_v24 }
 0x182   :  { %v966_v46 = vpop.f32.mrb[7].mxu1  ;;  %v3924_v25 = vld [vmem:[#allocation8 + $0x380] ss:$16 sps:$4 sm:$0xff]   ;;  %v3935_v28 = vld [vmem:[#allocation8 + $0x3ac] ss:$16 sps:$4 sm:$0xff]  }
 0x183   :  { %v3948_v45 = vld [vmem:[#allocation8 + $0x400] ss:$16 sps:$4 sm:$0xff]   ;;  %v3951_v46 = vld [vmem:[#allocation8 + $0x408] ss:$16 sps:$4 sm:$0xff]   ;;  %v4001_v24 = vld [vmem:[#allocation8 + $0x50c] ss:$16 sps:$4 sm:$0xff]  }
 0x184   :  { %2533 = vmatpush1.bf16.msra.mxu1 %v3864_v26  ;;  %2738 = vmatpush1.bf16.msra.mxu0 %v3867_v27  ;;  %v3927_v26 = vld [vmem:[#allocation8 + $0x388] ss:$16 sps:$4 sm:$0xff]   ;;  %v3932_v27 = vld [vmem:[#allocation8 + $0x3a4] ss:$16 sps:$4 sm:$0xff]   ;;  %v3984_v15 = vld [vmem:[#allocation8 + $0x4c0] ss:$16 sps:$4 sm:$0xff]  }
 0x185   :  { %2534 = vmatprep.subr.bf16.mxu1 %v3872_v29  ;;  %2739 = vmatprep.subr.bf16.mxu0 %v3875_v30  ;;  %v923_v29 = vadd.f32 %v4609_v23, %v548_v22  ;;  %v3930_v30 = vld [vmem:[#allocation8 + $0x3a0] ss:$16 sps:$4 sm:$0xff]   ;;  %v3998_v22 = vld [vmem:[#allocation8 + $0x504] ss:$16 sps:$4 sm:$0xff]  }
 0x186   :  { %v3942_v23 = vld [vmem:[#allocation8 + $0x3e0] ss:$16 sps:$4 sm:$0xff]  }
 0x187   :  { %4228 = vtanh.f32 %v923_v29  ;;  %v4002_v29 = vld [vmem:[#allocation8 + $0x520] ss:$16 sps:$4 sm:$0xff]  }
 0x188   :  { %2535 = vmatpush1.bf16.msra.mxu1 %v3870_v31  ;;  %2740 = vmatpush1.bf16.msra.mxu0 %v3873_v32  ;;  %v3933_v31 = vld [vmem:[#allocation8 + $0x3a8] ss:$16 sps:$4 sm:$0xff]   ;;  %v3938_v32 = vld [vmem:[#allocation8 + $0x3c4] ss:$16 sps:$4 sm:$0xff]  }
 0x189   :  { %2536 = vmatprep.subr.bf16.mxu1 %v3878_v33  ;;  %2741 = vmatprep.subr.bf16.mxu0 %v3881_v34  ;;  %v3941_v33 = vld [vmem:[#allocation8 + $0x3cc] ss:$16 sps:$4 sm:$0xff]   ;;  %v3939_v34 = vld [vmem:[#allocation8 + $0x3c8] ss:$16 sps:$4 sm:$0xff]  }
 0x18c   :  { %2537 = vmatpush1.bf16.msra.mxu1 %v3876_v35  ;;  %2742 = vmatpush1.bf16.msra.mxu0 %v3879_v36  ;;  %v3944_v35 = vld [vmem:[#allocation8 + $0x3e4] ss:$16 sps:$4 sm:$0xff]   ;;  %v3947_v36 = vld [vmem:[#allocation8 + $0x3ec] ss:$16 sps:$4 sm:$0xff]  }
 0x18d   :  { %2538 = vmatprep.subr.bf16.mxu1 %v3884_v37  ;;  %2743 = vmatprep.subr.bf16.mxu0 %v3887_v38  ;;  %v4227_v37 = vpop.eup %4226  ;;  %v3945_v38 = vld [vmem:[#allocation8 + $0x3e8] ss:$16 sps:$4 sm:$0xff]  }
 0x190   :  { %2539 = vmatpush1.bf16.msra.mxu1 %v3882_v40  ;;  %2744 = vmatpush1.bf16.msra.mxu0 %v3885_v41  ;;  %v3950_v40 = vld [vmem:[#allocation8 + $0x404] ss:$16 sps:$4 sm:$0xff]   ;;  %v3953_v41 = vld [vmem:[#allocation8 + $0x40c] ss:$16 sps:$4 sm:$0xff]  }
 0x191   :  { %2540 = vmatprep.subr.bf16.mxu1 %v3890_v43  ;;  %2745 = vmatprep.subr.bf16.mxu0 %v3893_v44  ;;  %v4615_v51 = vpop.f32.mrb[8].mxu0  ;;  %v4229_v43 = vpop.eup %4228  ;;  %v1019_v44 = vpack.c.bf16 %v4227_v37, %v4227_v37  ;;  %v555_v37 = vsub.s32 7, %v4589_v53 }
 0x192   :  { %v3636_v52 = vpop.f32.mrb[9].mxu0 }
 0x193   :  { %v1005_v57 = vpop.f32.mrb[10].mxu0  ;;  %v3957_v52 = vld [vmem:[#allocation8 + $0x428] ss:$16 sps:$4 sm:$0xff]  }
 0x194   :  { %2541 = vmatpush1.bf16.msra.mxu1 %v3888_v47  ;;  %2746 = vmatpush1.bf16.msra.mxu0 %v3891_v48  ;;  %v3637_v60 = vpop.f32.mrb[11].mxu0  ;;  %v3956_v47 = vld [vmem:[#allocation8 + $0x424] ss:$16 sps:$4 sm:$0xff]   ;;  %v3959_v48 = vld [vmem:[#allocation8 + $0x42c] ss:$16 sps:$4 sm:$0xff]  }
 0x195   :  { %2542 = vmatprep.subr.bf16.mxu1 %v3896_v49  ;;  %2747 = vmatprep.subr.bf16.mxu0 %v3899_v50  ;;  %v1022_v49 = vpack.c.bf16 %v4229_v43, %v4229_v43  ;;  %v3954_v50 = vld [vmem:[#allocation8 + $0x420] ss:$16 sps:$4 sm:$0xff]   ;;  %v3962_v57 = vld [vmem:[#allocation8 + $0x444] ss:$16 sps:$4 sm:$0xff]   ;;  %v3963_v60 = vld [vmem:[#allocation8 + $0x448] ss:$16 sps:$4 sm:$0xff]  }
 0x196   :  { %v4025_v43 = vld [vmem:[#allocation8 + $0x58c] ss:$16 sps:$4 sm:$0xff]  }
 0x198   :  { %2543 = vmatpush1.bf16.msra.mxu1 %v3894_v58  ;;  %2748 = vmatpush1.bf16.msra.mxu0 %v3897_v59  ;;  %v3965_v58 = vld [vmem:[#allocation8 + $0x44c] ss:$16 sps:$4 sm:$0xff]   ;;  %v3960_v59 = vld [vmem:[#allocation8 + $0x440] ss:$16 sps:$4 sm:$0xff]  }
 0x199   :  { %2544 = vmatprep.subr.bf16.mxu1 %v3902_v61  ;;  %2749 = vmatprep.subr.bf16.mxu0 %v3905_v63  ;;  %v3968_v61 = vld [vmem:[#allocation8 + $0x464] ss:$16 sps:$4 sm:$0xff]   ;;  %v3971_v63 = vld [vmem:[#allocation8 + $0x46c] ss:$16 sps:$4 sm:$0xff]  }
 0x19c   :  { %2545 = vmatpush1.bf16.msra.mxu1 %v3900_v1  ;;  %2750 = vmatpush1.bf16.msra.mxu0 %v3903_v2  ;;  %v3966_v1 = vld [vmem:[#allocation8 + $0x460] ss:$16 sps:$4 sm:$0xff]   ;;  %v3969_v2 = vld [vmem:[#allocation8 + $0x468] ss:$16 sps:$4 sm:$0xff]  }
 0x19d   :  { %2546 = vmatprep.subr.bf16.mxu1 %v3908_v3  ;;  %2751 = vmatprep.subr.bf16.mxu0 %v3911_v5  ;;  %v3974_v3 = vld [vmem:[#allocation8 + $0x484] ss:$16 sps:$4 sm:$0xff]   ;;  %v3977_v5 = vld [vmem:[#allocation8 + $0x48c] ss:$16 sps:$4 sm:$0xff]  }
 0x1a0   :  { %2547 = vmatpush1.bf16.msra.mxu1 %v3906_v6  ;;  %2752 = vmatpush1.bf16.msra.mxu0 %v3909_v7  ;;  %v3972_v6 = vld [vmem:[#allocation8 + $0x480] ss:$16 sps:$4 sm:$0xff]   ;;  %v3975_v7 = vld [vmem:[#allocation8 + $0x488] ss:$16 sps:$4 sm:$0xff]  }
 0x1a1   :  { %2548 = vmatprep.subr.bf16.mxu1 %v3914_v8  ;;  %2753 = vmatprep.subr.bf16.mxu0 %v3917_v9  ;;  %v3980_v8 = vld [vmem:[#allocation8 + $0x4a4] ss:$16 sps:$4 sm:$0xff]   ;;  %v3983_v9 = vld [vmem:[#allocation8 + $0x4ac] ss:$16 sps:$4 sm:$0xff]  }
 0x1a4   :  { %2549 = vmatpush1.bf16.msra.mxu1 %v3912_v11  ;;  %2754 = vmatpush1.bf16.msra.mxu0 %v3915_v12  ;;  %v3978_v11 = vld [vmem:[#allocation8 + $0x4a0] ss:$16 sps:$4 sm:$0xff]   ;;  %v3981_v12 = vld [vmem:[#allocation8 + $0x4a8] ss:$16 sps:$4 sm:$0xff]  }
 0x1a5   :  { %2550 = vmatprep.subr.bf16.mxu1 %v3920_v13  ;;  %2755 = vmatprep.subr.bf16.mxu0 %v3923_v14  ;;  %v3986_v13 = vld [vmem:[#allocation8 + $0x4c4] ss:$16 sps:$4 sm:$0xff]   ;;  %v3989_v14 = vld [vmem:[#allocation8 + $0x4cc] ss:$16 sps:$4 sm:$0xff]  }
 0x1a8   :  { %2551 = vmatpush1.bf16.msra.mxu1 %v3918_v17  ;;  %2756 = vmatpush1.bf16.msra.mxu0 %v3921_v18  ;;  %v3992_v17 = vld [vmem:[#allocation8 + $0x4e4] ss:$16 sps:$4 sm:$0xff]   ;;  %v3995_v18 = vld [vmem:[#allocation8 + $0x4ec] ss:$16 sps:$4 sm:$0xff]  }
 0x1a9   :  { %2552 = vmatprep.subr.bf16.mxu1 %v3926_v19  ;;  %2757 = vmatprep.subr.bf16.mxu0 %v3929_v20  ;;  %v3990_v19 = vld [vmem:[#allocation8 + $0x4e0] ss:$16 sps:$4 sm:$0xff]   ;;  %v3993_v20 = vld [vmem:[#allocation8 + $0x4e8] ss:$16 sps:$4 sm:$0xff]  }
 0x1ac   :  { %2553 = vmatpush1.bf16.msra.mxu1 %v3924_v25  ;;  %2758 = vmatpush1.bf16.msra.mxu0 %v3927_v26  ;;  %v3996_v25 = vld [vmem:[#allocation8 + $0x500] ss:$16 sps:$4 sm:$0xff]   ;;  %v3999_v26 = vld [vmem:[#allocation8 + $0x508] ss:$16 sps:$4 sm:$0xff]  }
 0x1ad   :  { %2554 = vmatprep.subr.bf16.mxu1 %v3932_v27  ;;  %2759 = vmatprep.subr.bf16.mxu0 %v3935_v28  ;;  %v4004_v27 = vld [vmem:[#allocation8 + $0x524] ss:$16 sps:$4 sm:$0xff]   ;;  %v4007_v28 = vld [vmem:[#allocation8 + $0x52c] ss:$16 sps:$4 sm:$0xff]  }
 0x1b0   :  { %2555 = vmatpush1.bf16.msra.mxu1 %v3930_v30  ;;  %2760 = vmatpush1.bf16.msra.mxu0 %v3933_v31  ;;  %v4005_v30 = vld [vmem:[#allocation8 + $0x528] ss:$16 sps:$4 sm:$0xff]   ;;  %v4010_v31 = vld [vmem:[#allocation8 + $0x544] ss:$16 sps:$4 sm:$0xff]  }
 0x1b1   :  { %2556 = vmatprep.subr.bf16.mxu1 %v3938_v32  ;;  %2761 = vmatprep.subr.bf16.mxu0 %v3941_v33  ;;  %v4013_v32 = vld [vmem:[#allocation8 + $0x54c] ss:$16 sps:$4 sm:$0xff]   ;;  %v543_v33 = vsub.s32 4, %v4589_v53 }
 0x1b4   :  { %2557 = vmatpush1.bf16.msra.mxu1 %v3936_v4  ;;  %2762 = vmatpush1.bf16.msra.mxu0 %v3939_v34  ;;  %v4008_v4 = vld [vmem:[#allocation8 + $0x540] ss:$16 sps:$4 sm:$0xff]   ;;  %v4011_v34 = vld [vmem:[#allocation8 + $0x548] ss:$16 sps:$4 sm:$0xff]  }
 0x1b5   :  { %2558 = vmatprep.subr.bf16.mxu1 %v3944_v35  ;;  %2763 = vmatprep.subr.bf16.mxu0 %v3947_v36  ;;  %v4016_v35 = vld [vmem:[#allocation8 + $0x564] ss:$16 sps:$4 sm:$0xff]   ;;  %v4019_v36 = vld [vmem:[#allocation8 + $0x56c] ss:$16 sps:$4 sm:$0xff]  }
 0x1b8   :  { %2559 = vmatpush1.bf16.msra.mxu1 %v3942_v23  ;;  %2764 = vmatpush1.bf16.msra.mxu0 %v3945_v38  ;;  %v544_v23 = vrot.slane %v4592_v55, %v543_v33  ;;  %v4014_v38 = vld [vmem:[#allocation8 + $0x560] ss:$16 sps:$4 sm:$0xff]   ;;  %v4077_v33 = vld [vmem:[#allocation8 + $0x6a8] ss:$16 sps:$4 sm:$0xff]  }
 0x1b9   :  { %2569 = vmatprep.subr.bf16.mxu1 %v3950_v40  ;;  %2774 = vmatprep.subr.bf16.mxu0 %v3953_v41  ;;  %v4017_v40 = vld [vmem:[#allocation8 + $0x568] ss:$16 sps:$4 sm:$0xff]   ;;  %v4022_v41 = vld [vmem:[#allocation8 + $0x584] ss:$16 sps:$4 sm:$0xff]  }
 0x1bb   :  { %2561 = vmatmul.mubr.bf16.vlgmr.msra.gmra.mrb[8].mxu1 %v1019_v44  ;;  %2766 = vmatmul.mubr.bf16.vlgmr.msra.gmra.mrb[12].mxu0 %v1019_v44  ;;  %v556_v44 = vrot.slane %v4592_v55, %v555_v37  ;;  %v4088_v37 = vld [vmem:[#allocation8 + $0x6e4] ss:$16 sps:$4 sm:$0xff]  }
 0x1bc   :  { %2570 = vmatpush1.bf16.msra.mxu1 %v3948_v45  ;;  %2775 = vmatpush1.bf16.msra.mxu0 %v3951_v46  ;;  %v921_v45 = vadd.f32 %v4607_v21, %v544_v23  ;;  %v4020_v46 = vld [vmem:[#allocation8 + $0x580] ss:$16 sps:$4 sm:$0xff]   ;;  %v4091_v23 = vld [vmem:[#allocation8 + $0x6ec] ss:$16 sps:$4 sm:$0xff]  }
 0x1bd   :  { %2571 = vmatprep.subr.bf16.mxu1 %v3956_v47  ;;  %2776 = vmatprep.subr.bf16.mxu0 %v3959_v48  ;;  %v4023_v47 = vld [vmem:[#allocation8 + $0x588] ss:$16 sps:$4 sm:$0xff]   ;;  %v4028_v48 = vld [vmem:[#allocation8 + $0x5a4] ss:$16 sps:$4 sm:$0xff]   ;;  %v4032_v21 = vld [vmem:[#allocation8 + $0x5c0] ss:$16 sps:$4 sm:$0xff]  }
 0x1be   :  { %2601 = vmatprep.mubr.bf16.mxu1 %v1022_v49  ;;  %2806 = vmatprep.mubr.bf16.mxu0 %v1022_v49  ;;  %v4031_v49 = vld [vmem:[#allocation8 + $0x5ac] ss:$16 sps:$4 sm:$0xff]   ;;  %4230 = vtanh.f32 %v921_v45  ;;  %v4095_v45 = vld [vmem:[#allocation8 + $0x708] ss:$16 sps:$4 sm:$0xff]  }
 0x1c0   :  { %2572 = vmatpush1.bf16.msra.mxu1 %v3954_v50  ;;  %2777 = vmatpush1.bf16.msra.mxu0 %v3957_v52  ;;  %v964_v50 = vadd.f32 %v4613_v42, %v556_v44  ;;  %v4026_v52 = vld [vmem:[#allocation8 + $0x5a0] ss:$16 sps:$4 sm:$0xff]  }
 0x1c1   :  { %2573 = vmatprep.subr.bf16.mxu1 %v3962_v57  ;;  %2778 = vmatprep.subr.bf16.mxu0 %v3965_v58  ;;  %v4029_v57 = vld [vmem:[#allocation8 + $0x5a8] ss:$16 sps:$4 sm:$0xff]   ;;  %v4034_v58 = vld [vmem:[#allocation8 + $0x5c4] ss:$16 sps:$4 sm:$0xff]   ;;  %v4038_v42 = vld [vmem:[#allocation8 + $0x5e0] ss:$16 sps:$4 sm:$0xff]  }
 0x1c2   :  { %4232 = vtanh.f32 %v964_v50  ;;  %v4092_v44 = vld [vmem:[#allocation8 + $0x700] ss:$16 sps:$4 sm:$0xff]   ;;  %v4106_v50 = vld [vmem:[#allocation8 + $0x744] ss:$16 sps:$4 sm:$0xff]  }
 0x1c4   :  { %2574 = vmatpush1.bf16.msra.mxu1 %v3960_v59  ;;  %2779 = vmatpush1.bf16.msra.mxu0 %v3963_v60  ;;  %v4037_v59 = vld [vmem:[#allocation8 + $0x5cc] ss:$16 sps:$4 sm:$0xff]   ;;  %v4035_v60 = vld [vmem:[#allocation8 + $0x5c8] ss:$16 sps:$4 sm:$0xff]  }
 0x1c5   :  { %2575 = vmatprep.subr.bf16.mxu1 %v3968_v61  ;;  %2780 = vmatprep.subr.bf16.mxu0 %v3971_v63  ;;  %v4040_v61 = vld [vmem:[#allocation8 + $0x5e4] ss:$16 sps:$4 sm:$0xff]   ;;  %v4043_v63 = vld [vmem:[#allocation8 + $0x5ec] ss:$16 sps:$4 sm:$0xff]  }
 0x1c8   :  { %2576 = vmatpush1.bf16.msra.mxu1 %v3966_v1  ;;  %2781 = vmatpush1.bf16.msra.mxu0 %v3969_v2  ;;  %v4231_v1 = vpop.eup %4230  ;;  %v4041_v2 = vld [vmem:[#allocation8 + $0x5e8] ss:$16 sps:$4 sm:$0xff]  }
 0x1c9   :  { %2577 = vmatprep.subr.bf16.mxu1 %v3974_v3  ;;  %2782 = vmatprep.subr.bf16.mxu0 %v3977_v5  ;;  %v4046_v3 = vld [vmem:[#allocation8 + $0x604] ss:$16 sps:$4 sm:$0xff]   ;;  %v4049_v5 = vld [vmem:[#allocation8 + $0x60c] ss:$16 sps:$4 sm:$0xff]  }
 0x1cc   :  { %2578 = vmatpush1.bf16.msra.mxu1 %v3972_v6  ;;  %2783 = vmatpush1.bf16.msra.mxu0 %v3975_v7  ;;  %v4233_v6 = vpop.eup %4232  ;;  %v1021_v7 = vpack.c.bf16 %v4231_v1, %v4231_v1  ;;  %v4113_v1 = vld [vmem:[#allocation8 + $0x768] ss:$16 sps:$4 sm:$0xff]  }
 0x1cd   :  { %2579 = vmatprep.subr.bf16.mxu1 %v3980_v8  ;;  %2784 = vmatprep.subr.bf16.mxu0 %v3983_v9  ;;  %v4044_v8 = vld [vmem:[#allocation8 + $0x600] ss:$16 sps:$4 sm:$0xff]   ;;  %v4047_v9 = vld [vmem:[#allocation8 + $0x608] ss:$16 sps:$4 sm:$0xff]  }
 0x1d0   :  { %2580 = vmatpush1.bf16.msra.mxu1 %v3978_v11  ;;  %2785 = vmatpush1.bf16.msra.mxu0 %v3981_v12  ;;  %v4052_v11 = vld [vmem:[#allocation8 + $0x624] ss:$16 sps:$4 sm:$0xff]   ;;  %v4055_v12 = vld [vmem:[#allocation8 + $0x62c] ss:$16 sps:$4 sm:$0xff]  }
 0x1d1   :  { %2581 = vmatprep.subr.bf16.mxu1 %v3986_v13  ;;  %2786 = vmatprep.subr.bf16.mxu0 %v3989_v14  ;;  %v1024_v13 = vpack.c.bf16 %v4233_v6, %v4233_v6  ;;  %v4050_v14 = vld [vmem:[#allocation8 + $0x620] ss:$16 sps:$4 sm:$0xff]   ;;  %v4119_v6 = vld [vmem:[#allocation8 + $0x788] ss:$16 sps:$4 sm:$0xff]  }
 0x1d4   :  { %2582 = vmatpush1.bf16.msra.mxu1 %v3984_v15  ;;  %2787 = vmatpush1.bf16.msra.mxu0 %v3987_v16  ;;  %v4053_v15 = vld [vmem:[#allocation8 + $0x628] ss:$16 sps:$4 sm:$0xff]   ;;  %v4058_v16 = vld [vmem:[#allocation8 + $0x644] ss:$16 sps:$4 sm:$0xff]  }
 0x1d5   :  { %2583 = vmatprep.subr.bf16.mxu1 %v3992_v17  ;;  %2788 = vmatprep.subr.bf16.mxu0 %v3995_v18  ;;  %v4061_v17 = vld [vmem:[#allocation8 + $0x64c] ss:$16 sps:$4 sm:$0xff]   ;;  %v4056_v18 = vld [vmem:[#allocation8 + $0x640] ss:$16 sps:$4 sm:$0xff]  }
 0x1d8   :  { %2584 = vmatpush1.bf16.msra.mxu1 %v3990_v19  ;;  %2789 = vmatpush1.bf16.msra.mxu0 %v3993_v20  ;;  %v4059_v19 = vld [vmem:[#allocation8 + $0x648] ss:$16 sps:$4 sm:$0xff]   ;;  %v4064_v20 = vld [vmem:[#allocation8 + $0x664] ss:$16 sps:$4 sm:$0xff]  }
 0x1d9   :  { %2585 = vmatprep.subr.bf16.mxu1 %v3998_v22  ;;  %2790 = vmatprep.subr.bf16.mxu0 %v4001_v24  ;;  %v4067_v22 = vld [vmem:[#allocation8 + $0x66c] ss:$16 sps:$4 sm:$0xff]   ;;  %v4062_v24 = vld [vmem:[#allocation8 + $0x660] ss:$16 sps:$4 sm:$0xff]  }
 0x1dc   :  { %2586 = vmatpush1.bf16.msra.mxu1 %v3996_v25  ;;  %2791 = vmatpush1.bf16.msra.mxu0 %v3999_v26  ;;  %v4065_v25 = vld [vmem:[#allocation8 + $0x668] ss:$16 sps:$4 sm:$0xff]   ;;  %v4070_v26 = vld [vmem:[#allocation8 + $0x684] ss:$16 sps:$4 sm:$0xff]  }
 0x1dd   :  { %2587 = vmatprep.subr.bf16.mxu1 %v4004_v27  ;;  %2792 = vmatprep.subr.bf16.mxu0 %v4007_v28  ;;  %v4073_v27 = vld [vmem:[#allocation8 + $0x68c] ss:$16 sps:$4 sm:$0xff]   ;;  %v4068_v28 = vld [vmem:[#allocation8 + $0x680] ss:$16 sps:$4 sm:$0xff]  }
 0x1e0   :  { %2588 = vmatpush1.bf16.msra.mxu1 %v4002_v29  ;;  %2793 = vmatpush1.bf16.msra.mxu0 %v4005_v30  ;;  %v4071_v29 = vld [vmem:[#allocation8 + $0x688] ss:$16 sps:$4 sm:$0xff]   ;;  %v4076_v30 = vld [vmem:[#allocation8 + $0x6a4] ss:$16 sps:$4 sm:$0xff]  }
 0x1e1   :  { %2589 = vmatprep.subr.bf16.mxu1 %v4010_v31  ;;  %2794 = vmatprep.subr.bf16.mxu0 %v4013_v32  ;;  %v4079_v31 = vld [vmem:[#allocation8 + $0x6ac] ss:$16 sps:$4 sm:$0xff]   ;;  %v4074_v32 = vld [vmem:[#allocation8 + $0x6a0] ss:$16 sps:$4 sm:$0xff]  }
 0x1e4   :  { %2590 = vmatpush1.bf16.msra.mxu1 %v4008_v4  ;;  %2795 = vmatpush1.bf16.msra.mxu0 %v4011_v34  ;;  %v4082_v4 = vld [vmem:[#allocation8 + $0x6c4] ss:$16 sps:$4 sm:$0xff]   ;;  %v4085_v34 = vld [vmem:[#allocation8 + $0x6cc] ss:$16 sps:$4 sm:$0xff]  }
 0x1e5   :  { %2591 = vmatprep.subr.bf16.mxu1 %v4016_v35  ;;  %2796 = vmatprep.subr.bf16.mxu0 %v4019_v36  ;;  %v4080_v35 = vld [vmem:[#allocation8 + $0x6c0] ss:$16 sps:$4 sm:$0xff]   ;;  %v4083_v36 = vld [vmem:[#allocation8 + $0x6c8] ss:$16 sps:$4 sm:$0xff]  }
 0x1e8   :  { %2592 = vmatpush1.bf16.msra.mxu1 %v4014_v38  ;;  %2797 = vmatpush1.bf16.msra.mxu0 %v4017_v40  ;;  %v4086_v38 = vld [vmem:[#allocation8 + $0x6e0] ss:$16 sps:$4 sm:$0xff]   ;;  %v4089_v40 = vld [vmem:[#allocation8 + $0x6e8] ss:$16 sps:$4 sm:$0xff]  }
 0x1e9   :  { %2593 = vmatprep.subr.bf16.mxu1 %v4022_v41  ;;  %2798 = vmatprep.subr.bf16.mxu0 %v4025_v43  ;;  %v4094_v41 = vld [vmem:[#allocation8 + $0x704] ss:$16 sps:$4 sm:$0xff]   ;;  %v4097_v43 = vld [vmem:[#allocation8 + $0x70c] ss:$16 sps:$4 sm:$0xff]  }
 0x1ec   :  { %2594 = vmatpush1.bf16.msra.mxu1 %v4020_v46  ;;  %2799 = vmatpush1.bf16.msra.mxu0 %v4023_v47  ;;  %v4100_v46 = vld [vmem:[#allocation8 + $0x724] ss:$16 sps:$4 sm:$0xff]   ;;  %v4103_v47 = vld [vmem:[#allocation8 + $0x72c] ss:$16 sps:$4 sm:$0xff]  }
 0x1ed   :  { %2595 = vmatprep.subr.bf16.mxu1 %v4028_v48  ;;  %2800 = vmatprep.subr.bf16.mxu0 %v4031_v49  ;;  %v4098_v48 = vld [vmem:[#allocation8 + $0x720] ss:$16 sps:$4 sm:$0xff]   ;;  %v4101_v49 = vld [vmem:[#allocation8 + $0x728] ss:$16 sps:$4 sm:$0xff]  }
 0x1f0   :  { %2596 = vmatpush1.bf16.msra.mxu1 %v4026_v52  ;;  %2801 = vmatpush1.bf16.msra.mxu0 %v4029_v57  ;;  %v4109_v52 = vld [vmem:[#allocation8 + $0x74c] ss:$16 sps:$4 sm:$0xff]   ;;  %v551_v57 = vsub.s32 6, %v4589_v53 }
 0x1f1   :  { %2597 = vmatprep.subr.bf16.mxu1 %v4034_v58  ;;  %2802 = vmatprep.subr.bf16.mxu0 %v4037_v59  ;;  %v4104_v58 = vld [vmem:[#allocation8 + $0x740] ss:$16 sps:$4 sm:$0xff]   ;;  %v4107_v59 = vld [vmem:[#allocation8 + $0x748] ss:$16 sps:$4 sm:$0xff]  }
 0x1f4   :  { %2598 = vmatpush1.bf16.msra.mxu1 %v4032_v21  ;;  %2803 = vmatpush1.bf16.msra.mxu0 %v4035_v60  ;;  %v4112_v21 = vld [vmem:[#allocation8 + $0x764] ss:$16 sps:$4 sm:$0xff]   ;;  %v4115_v60 = vld [vmem:[#allocation8 + $0x76c] ss:$16 sps:$4 sm:$0xff]  }
 0x1f5   :  { %2599 = vmatprep.subr.bf16.mxu1 %v4040_v61  ;;  %2804 = vmatprep.subr.bf16.mxu0 %v4043_v63  ;;  %v552_v61 = vrot.slane %v4592_v55, %v551_v57  ;;  %v4110_v63 = vld [vmem:[#allocation8 + $0x760] ss:$16 sps:$4 sm:$0xff]  }
 0x1f6   :  { %v4122_v55 = vld [vmem:[#allocation8 + $0x7a0] ss:$16 sps:$4 sm:$0xff]  }
 0x1f7   :  { %v4182_v57 = vld [vmem:[#allocation8 + $0x8e0] ss:$16 sps:$4 sm:$0xff]  }
 0x1f8   :  { %2600 = vmatpush1.bf16.msra.mxu1 %v4038_v42  ;;  %2805 = vmatpush1.bf16.msra.mxu0 %v4041_v2  ;;  %v4118_v42 = vld [vmem:[#allocation8 + $0x784] ss:$16 sps:$4 sm:$0xff]   ;;  %v4121_v2 = vld [vmem:[#allocation8 + $0x78c] ss:$16 sps:$4 sm:$0xff]  }
 0x1f9   :  { %2610 = vmatprep.subr.bf16.mxu1 %v4046_v3  ;;  %2815 = vmatprep.subr.bf16.mxu0 %v4049_v5  ;;  %v962_v3 = vadd.f32 %v4611_v39, %v552_v61  ;;  %v4116_v5 = vld [vmem:[#allocation8 + $0x780] ss:$16 sps:$4 sm:$0xff]   ;;  %v4190_v61 = vld [vmem:[#allocation11] sm:$0xff]  }
 0x1fa   :  { %v4128_v39 = vld [vmem:[#allocation8 + $0x7c0] ss:$16 sps:$4 sm:$0xff]  }
 0x1fb   :  { %2602 = vmatmul.mubr.bf16.vlgmr.msra.gmra.mrb[8].mxu1 %v1021_v7  ;;  %2807 = vmatmul.mubr.bf16.vlgmr.msra.gmra.mrb[12].mxu0 %v1021_v7  ;;  %v4124_v7 = vld [vmem:[#allocation8 + $0x7a4] ss:$16 sps:$4 sm:$0xff]   ;;  %4234 = vtanh.f32 %v962_v3  ;;  %v4194_v3 = vld [vmem:[#allocation11 + $0x8] sm:$0xff]  }
 0x1fc   :  { %2611 = vmatpush1.bf16.msra.mxu1 %v4044_v8  ;;  %2816 = vmatpush1.bf16.msra.mxu0 %v4047_v9  ;;  %v4127_v8 = vld [vmem:[#allocation8 + $0x7ac] ss:$16 sps:$4 sm:$0xff]   ;;  %v4125_v9 = vld [vmem:[#allocation8 + $0x7a8] ss:$16 sps:$4 sm:$0xff]  }
 0x1fd   :  { %2612 = vmatprep.subr.bf16.mxu1 %v4052_v11  ;;  %2817 = vmatprep.subr.bf16.mxu0 %v4055_v12  ;;  %v4130_v11 = vld [vmem:[#allocation8 + $0x7c4] ss:$16 sps:$4 sm:$0xff]   ;;  %v4133_v12 = vld [vmem:[#allocation8 + $0x7cc] ss:$16 sps:$4 sm:$0xff]  }
 0x1fe   :  { %2642 = vmatprep.mubr.bf16.mxu1 %v1024_v13  ;;  %2847 = vmatprep.mubr.bf16.mxu0 %v1024_v13  ;;  %v4131_v13 = vld [vmem:[#allocation8 + $0x7c8] ss:$16 sps:$4 sm:$0xff]  }
 0x200   :  { %2613 = vmatpush1.bf16.msra.mxu1 %v4050_v14  ;;  %2818 = vmatpush1.bf16.msra.mxu0 %v4053_v15  ;;  %v4136_v14 = vld [vmem:[#allocation8 + $0x7e4] ss:$16 sps:$4 sm:$0xff]   ;;  %v4139_v15 = vld [vmem:[#allocation8 + $0x7ec] ss:$16 sps:$4 sm:$0xff]  }
 0x201   :  { %2614 = vmatprep.subr.bf16.mxu1 %v4058_v16  ;;  %2819 = vmatprep.subr.bf16.mxu0 %v4061_v17  ;;  %v4134_v16 = vld [vmem:[#allocation8 + $0x7e0] ss:$16 sps:$4 sm:$0xff]   ;;  %v4137_v17 = vld [vmem:[#allocation8 + $0x7e8] ss:$16 sps:$4 sm:$0xff]  }
 0x204   :  { %2615 = vmatpush1.bf16.msra.mxu1 %v4056_v18  ;;  %2820 = vmatpush1.bf16.msra.mxu0 %v4059_v19  ;;  %v4142_v18 = vld [vmem:[#allocation8 + $0x804] ss:$16 sps:$4 sm:$0xff]   ;;  %v4145_v19 = vld [vmem:[#allocation8 + $0x80c] ss:$16 sps:$4 sm:$0xff]  }
 0x205   :  { %2616 = vmatprep.subr.bf16.mxu1 %v4064_v20  ;;  %2821 = vmatprep.subr.bf16.mxu0 %v4067_v22  ;;  %v4235_v20 = vpop.eup %4234  ;;  %v4140_v22 = vld [vmem:[#allocation8 + $0x800] ss:$16 sps:$4 sm:$0xff]  }
 0x208   :  { %2617 = vmatpush1.bf16.msra.mxu1 %v4062_v24  ;;  %2822 = vmatpush1.bf16.msra.mxu0 %v4065_v25  ;;  %v4143_v24 = vld [vmem:[#allocation8 + $0x808] ss:$16 sps:$4 sm:$0xff]   ;;  %v1023_v25 = vpack.c.bf16 %v4235_v20, %v4235_v20  ;;  %v4211_v20 = vld [vmem:[#allocation11 + $0xa8] sm:$0xff]  }
 0x209   :  { %2618 = vmatprep.subr.bf16.mxu1 %v4070_v26  ;;  %2823 = vmatprep.subr.bf16.mxu0 %v4073_v27  ;;  %v4148_v26 = vld [vmem:[#allocation8 + $0x824] ss:$16 sps:$4 sm:$0xff]   ;;  %v4151_v27 = vld [vmem:[#allocation8 + $0x82c] ss:$16 sps:$4 sm:$0xff]  }
 0x20c   :  { %2619 = vmatpush1.bf16.msra.mxu1 %v4068_v28  ;;  %2824 = vmatpush1.bf16.msra.mxu0 %v4071_v29  ;;  %v4146_v28 = vld [vmem:[#allocation8 + $0x820] ss:$16 sps:$4 sm:$0xff]   ;;  %v4149_v29 = vld [vmem:[#allocation8 + $0x828] ss:$16 sps:$4 sm:$0xff]  }
 0x20d   :  { %2620 = vmatprep.subr.bf16.mxu1 %v4076_v30  ;;  %2825 = vmatprep.subr.bf16.mxu0 %v4079_v31  ;;  %v4154_v30 = vld [vmem:[#allocation8 + $0x844] ss:$16 sps:$4 sm:$0xff]   ;;  %v4157_v31 = vld [vmem:[#allocation8 + $0x84c] ss:$16 sps:$4 sm:$0xff]  }
 0x210   :  { %2621 = vmatpush1.bf16.msra.mxu1 %v4074_v32  ;;  %2826 = vmatpush1.bf16.msra.mxu0 %v4077_v33  ;;  %v4152_v32 = vld [vmem:[#allocation8 + $0x840] ss:$16 sps:$4 sm:$0xff]   ;;  %v4155_v33 = vld [vmem:[#allocation8 + $0x848] ss:$16 sps:$4 sm:$0xff]  }
 0x211   :  { %2622 = vmatprep.subr.bf16.mxu1 %v4082_v4  ;;  %2827 = vmatprep.subr.bf16.mxu0 %v4085_v34  ;;  %v4160_v4 = vld [vmem:[#allocation8 + $0x864] ss:$16 sps:$4 sm:$0xff]   ;;  %v4163_v34 = vld [vmem:[#allocation8 + $0x86c] ss:$16 sps:$4 sm:$0xff]  }
 0x214   :  { %2623 = vmatpush1.bf16.msra.mxu1 %v4080_v35  ;;  %2828 = vmatpush1.bf16.msra.mxu0 %v4083_v36  ;;  %v4158_v35 = vld [vmem:[#allocation8 + $0x860] ss:$16 sps:$4 sm:$0xff]   ;;  %v4161_v36 = vld [vmem:[#allocation8 + $0x868] ss:$16 sps:$4 sm:$0xff]  }
 0x215   :  { %2624 = vmatprep.subr.bf16.mxu1 %v4088_v37  ;;  %2829 = vmatprep.subr.bf16.mxu0 %v4091_v23  ;;  %v3202_v37 = vld [vmem:[#allocation7 + $0x8] ss:$0 sm:$0xff]  ;;  %v4166_v23 = vld [vmem:[#allocation8 + $0x884] ss:$16 sps:$4 sm:$0xff]  }
 0x218   :  { %2625 = vmatpush1.bf16.msra.mxu1 %v4086_v38  ;;  %2830 = vmatpush1.bf16.msra.mxu0 %v4089_v40  ;;  %v4169_v38 = vld [vmem:[#allocation8 + $0x88c] ss:$16 sps:$4 sm:$0xff]   ;;  %v1003_v40 = vadd.f32 %v3202_v37, %v4615_v51  ;;  %v4176_v51 = vld [vmem:[#allocation8 + $0x8c0] ss:$16 sps:$4 sm:$0xff]  }
 0x219   :  { %2626 = vmatprep.subr.bf16.mxu1 %v4094_v41  ;;  %2831 = vmatprep.subr.bf16.mxu0 %v4097_v43  ;;  %v4167_v41 = vld [vmem:[#allocation8 + $0x888] ss:$16 sps:$4 sm:$0xff]   ;;  %v4172_v43 = vld [vmem:[#allocation8 + $0x8a4] ss:$16 sps:$4 sm:$0xff]  }
 0x21a   :  { %4236 = vtanh.f32 %v1003_v40 }
 0x21c   :  { %2627 = vmatpush1.bf16.msra.mxu1 %v4092_v44  ;;  %2832 = vmatpush1.bf16.msra.mxu0 %v4095_v45  ;;  %v4175_v44 = vld [vmem:[#allocation8 + $0x8ac] ss:$16 sps:$4 sm:$0xff]   ;;  %v4170_v45 = vld [vmem:[#allocation8 + $0x8a0] ss:$16 sps:$4 sm:$0xff]  }
 0x21d   :  { %2628 = vmatprep.subr.bf16.mxu1 %v4100_v46  ;;  %2833 = vmatprep.subr.bf16.mxu0 %v4103_v47  ;;  %v4173_v46 = vld [vmem:[#allocation8 + $0x8a8] ss:$16 sps:$4 sm:$0xff]   ;;  %v4178_v47 = vld [vmem:[#allocation8 + $0x8c4] ss:$16 sps:$4 sm:$0xff]  }
 0x220   :  { %2629 = vmatpush1.bf16.msra.mxu1 %v4098_v48  ;;  %2834 = vmatpush1.bf16.msra.mxu0 %v4101_v49  ;;  %v4181_v48 = vld [vmem:[#allocation8 + $0x8cc] ss:$16 sps:$4 sm:$0xff]   ;;  %v4179_v49 = vld [vmem:[#allocation8 + $0x8c8] ss:$16 sps:$4 sm:$0xff]  }
 0x221   :  { %2630 = vmatprep.subr.bf16.mxu1 %v4106_v50  ;;  %2835 = vmatprep.subr.bf16.mxu0 %v4109_v52  ;;  %v4184_v50 = vld [vmem:[#allocation8 + $0x8e4] ss:$16 sps:$4 sm:$0xff]   ;;  %v4187_v52 = vld [vmem:[#allocation8 + $0x8ec] ss:$16 sps:$4 sm:$0xff]  }
 0x224   :  { %2631 = vmatpush1.bf16.msra.mxu1 %v4104_v58  ;;  %2836 = vmatpush1.bf16.msra.mxu0 %v4107_v59  ;;  %v4185_v58 = vld [vmem:[#allocation8 + $0x8e8] ss:$16 sps:$4 sm:$0xff]  }
 0x225   :  { %2632 = vmatprep.subr.bf16.mxu1 %v4112_v21  ;;  %2837 = vmatprep.subr.bf16.mxu0 %v4115_v60  ;;  %v4188_v59 = vld [vmem:[#allocation11 + $0x40] sm:$0xff]   ;;  %v4237_v60 = vpop.eup %4236 }
 0x226   :  { %v4189_v21 = vld [vmem:[#allocation11 + $0xc0] sm:$0xff]  }
 0x228   :  { %2633 = vmatpush1.bf16.msra.mxu1 %v4110_v63  ;;  %2838 = vmatpush1.bf16.msra.mxu0 %v4113_v1  ;;  %v4191_v63 = vld [vmem:[#allocation11 + $0x80] sm:$0xff]   ;;  %v1025_v1 = vpack.c.bf16 %v4237_v60, %v4237_v60 }
 0x229   :  { %2634 = vmatprep.subr.bf16.mxu1 %v4118_v42  ;;  %2839 = vmatprep.subr.bf16.mxu0 %v4121_v2  ;;  %v4192_v42 = vld [vmem:[#allocation11 + $0x48] sm:$0xff]  }
 0x22a   :  { %v4193_v2 = vld [vmem:[#allocation11 + $0xc8] sm:$0xff]  }
 0x22c   :  { %2635 = vmatpush1.bf16.msra.mxu1 %v4116_v5  ;;  %2840 = vmatpush1.bf16.msra.mxu0 %v4119_v6  ;;  %v4195_v5 = vld [vmem:[#allocation11 + $0x88] sm:$0xff]   ;;  %v4196_v6 = vld [vmem:[#allocation11 + $0x50] sm:$0xff]  }
 0x22d   :  { %2636 = vmatprep.subr.bf16.mxu1 %v4124_v7  ;;  %2841 = vmatprep.subr.bf16.mxu0 %v4127_v8  ;;  %v4197_v7 = vld [vmem:[#allocation11 + $0xd0] sm:$0xff]  }
 0x22e   :  { %v4198_v8 = vld [vmem:[#allocation11 + $0x10] sm:$0xff]  }
 0x230   :  { %2637 = vmatpush1.bf16.msra.mxu1 %v4122_v55  ;;  %2842 = vmatpush1.bf16.msra.mxu0 %v4125_v9  ;;  %v4199_v55 = vld [vmem:[#allocation11 + $0x90] sm:$0xff]   ;;  %v4200_v9 = vld [vmem:[#allocation11 + $0x58] sm:$0xff]  }
 0x231   :  { %2638 = vmatprep.subr.bf16.mxu1 %v4130_v11  ;;  %2843 = vmatprep.subr.bf16.mxu0 %v4133_v12  ;;  %v4201_v11 = vld [vmem:[#allocation11 + $0xd8] sm:$0xff]  }
 0x232   :  { %v4202_v12 = vld [vmem:[#allocation11 + $0x18] sm:$0xff]  }
 0x234   :  { %2639 = vmatpush1.bf16.msra.mxu1 %v4128_v39  ;;  %2844 = vmatpush1.bf16.msra.mxu0 %v4131_v13  ;;  %v4203_v39 = vld [vmem:[#allocation11 + $0x98] sm:$0xff]   ;;  %v4204_v13 = vld [vmem:[#allocation11 + $0x60] sm:$0xff]  }
 0x235   :  { %2640 = vmatprep.subr.bf16.mxu1 %v4136_v14  ;;  %2845 = vmatprep.subr.bf16.mxu0 %v4139_v15  ;;  %v4205_v14 = vld [vmem:[#allocation11 + $0xe0] sm:$0xff]  }
 0x236   :  { %v4206_v15 = vld [vmem:[#allocation11 + $0x20] sm:$0xff]  }
 0x238   :  { %2641 = vmatpush1.bf16.msra.mxu1 %v4134_v16  ;;  %2846 = vmatpush1.bf16.msra.mxu0 %v4137_v17  ;;  %v4207_v16 = vld [vmem:[#allocation11 + $0xa0] sm:$0xff]   ;;  %v4208_v17 = vld [vmem:[#allocation11 + $0x68] sm:$0xff]  }
 0x239   :  { %2651 = vmatprep.subr.bf16.mxu1 %v4142_v18  ;;  %2856 = vmatprep.subr.bf16.mxu0 %v4145_v19  ;;  %v4209_v18 = vld [vmem:[#allocation11 + $0xe8] sm:$0xff]  }
 0x23a   :  { %v4210_v19 = vld [vmem:[#allocation11 + $0x28] sm:$0xff]  }
 0x23b   :  { %2643 = vmatmul.mubr.bf16.vlgmr.msra.gmra.mrb[8].mxu1 %v1023_v25  ;;  %2848 = vmatmul.mubr.bf16.vlgmr.msra.gmra.mrb[12].mxu0 %v1023_v25  ;;  %v4214_v25 = vld [vmem:[#allocation11 + $0x30] sm:$0xff]  }
 0x23c   :  { %2652 = vmatpush1.bf16.msra.mxu1 %v4140_v22  ;;  %2857 = vmatpush1.bf16.msra.mxu0 %v4143_v24  ;;  %v4212_v22 = vld [vmem:[#allocation11 + $0x70] sm:$0xff]  }
 0x23d   :  { %2653 = vmatprep.subr.bf16.mxu1 %v4148_v26  ;;  %2858 = vmatprep.subr.bf16.mxu0 %v4151_v27  ;;  %v4213_v24 = vld [vmem:[#allocation11 + $0xf0] sm:$0xff]   ;;  %v4216_v27 = vld [vmem:[#allocation11 + $0x78] sm:$0xff]  }
 0x23e   :  { %2683 = vmatprep.mubr.bf16.mxu1 %v4445_v0  ;;  %2888 = vmatprep.mubr.bf16.mxu0 %v4445_v0  ;;  %v4164_v0 = vld [vmem:[#allocation8 + $0x880] ss:$16 sps:$4 sm:$0xff]   ;;  %v4215_v26 = vld [vmem:[#allocation11 + $0xb0] sm:$0xff]  }
 0x240   :  { %2654 = vmatpush1.bf16.msra.mxu1 %v4146_v28  ;;  %2859 = vmatpush1.bf16.msra.mxu0 %v4149_v29  ;;  %v4217_v28 = vld [vmem:[#allocation11 + $0xf8] sm:$0xff]  }
 0x241   :  { %2655 = vmatprep.subr.bf16.mxu1 %v4154_v30  ;;  %2860 = vmatprep.subr.bf16.mxu0 %v4157_v31  ;;  %v4218_v29 = vld [vmem:[#allocation11 + $0x38] sm:$0xff]  }
 0x242   :  { %v4219_v30 = vld [vmem:[#allocation11 + $0xb8] sm:$0xff]  }
 0x243   :  { %v455_v31 = vld [vmem:[#allocation10] sm:$0xf] }
 0x244   :  { %2656 = vmatpush1.bf16.msra.mxu1 %v4152_v32  ;;  %2861 = vmatpush1.bf16.msra.mxu0 %v4155_v33  ;;  %v1030_v32 = vrot.slane %v455_v31, %v527_v54  ;;  %v1038_v33 = vrot.slane %v455_v31, %v535_v10 }
 0x245   :  { %2657 = vmatprep.subr.bf16.mxu1 %v4160_v4  ;;  %2862 = vmatprep.subr.bf16.mxu0 %v4163_v34  ;;  %v1034_v4 = vrot.slane %v455_v31, %v531_v56  ;;  %v1042_v34 = vrot.slane %v455_v31, %v539_v62 }
 0x248   :  { %2658 = vmatpush1.bf16.msra.mxu1 %v4158_v35  ;;  %2863 = vmatpush1.bf16.msra.mxu0 %v4161_v36 }
 0x249   :  { %2659 = vmatprep.subr.bf16.mxu1 %v4166_v23  ;;  %2864 = vmatprep.subr.bf16.mxu0 %v4169_v38 }
 0x24c   :  { %2660 = vmatpush1.bf16.msra.mxu1 %v4164_v0  ;;  %2865 = vmatpush1.bf16.msra.mxu0 %v4167_v41 }
 0x24d   :  { %2661 = vmatprep.subr.bf16.mxu1 %v4172_v43  ;;  %2866 = vmatprep.subr.bf16.mxu0 %v4175_v44 }
 0x250   :  { %2662 = vmatpush1.bf16.msra.mxu1 %v4170_v45  ;;  %2867 = vmatpush1.bf16.msra.mxu0 %v4173_v46 }
 0x251   :  { %2663 = vmatprep.subr.bf16.mxu1 %v4178_v47  ;;  %2868 = vmatprep.subr.bf16.mxu0 %v4181_v48 }
 0x254   :  { %2664 = vmatpush1.bf16.msra.mxu1 %v4176_v51  ;;  %2869 = vmatpush1.bf16.msra.mxu0 %v4179_v49 }
 0x255   :  { %2665 = vmatprep.subr.bf16.mxu1 %v4184_v50  ;;  %2870 = vmatprep.subr.bf16.mxu0 %v4187_v52  ;;  %v3541_v52 = vld [vmem:[#allocation13] ss:$0 sm:$0xff] }
 0x258   :  { %2666 = vmatpush1.bf16.msra.mxu1 %v4182_v57  ;;  %2871 = vmatpush1.bf16.msra.mxu0 %v4185_v58 }
 0x259   :  { %3580 = vmatprep.subr.bf16.mxu1 %v4188_v59  ;;  %3602 = vmatprep.subr.bf16.mxu0 %v4189_v21 }
 0x25b   :  { %2684 = vmatmul.mubr.bf16.vlgmr.msra.gmra.mrb[8].mxu1 %v1025_v1  ;;  %2889 = vmatmul.mubr.bf16.vlgmr.msra.gmra.mrb[12].mxu0 %v1025_v1 }
 0x25c   :  { %3581 = vmatpush3.bf16.msra.mxu1 %v4190_v61  ;;  %3603 = vmatpush3.bf16.msra.mxu0 %v4191_v63 }
 0x25d   :  { %3582 = vmatprep.subr.bf16.mxu1 %v4192_v42  ;;  %3604 = vmatprep.subr.bf16.mxu0 %v4193_v2 }
 0x260   :  { %3583 = vmatpush3.bf16.msra.mxu1 %v4194_v3  ;;  %3605 = vmatpush3.bf16.msra.mxu0 %v4195_v5 }
 0x261   :  { %3584 = vmatprep.subr.bf16.mxu1 %v4196_v6  ;;  %3606 = vmatprep.subr.bf16.mxu0 %v4197_v7 }
 0x264   :  { %3585 = vmatpush3.bf16.msra.mxu1 %v4198_v8  ;;  %3607 = vmatpush3.bf16.msra.mxu0 %v4199_v55 }
 0x265   :  { %3586 = vmatprep.subr.bf16.mxu1 %v4200_v9  ;;  %3608 = vmatprep.subr.bf16.mxu0 %v4201_v11 }
 0x268   :  { %3587 = vmatpush3.bf16.msra.mxu1 %v4202_v12  ;;  %3609 = vmatpush3.bf16.msra.mxu0 %v4203_v39 }
 0x269   :  { %3588 = vmatprep.subr.bf16.mxu1 %v4204_v13  ;;  %3610 = vmatprep.subr.bf16.mxu0 %v4205_v14 }
 0x26c   :  { %3589 = vmatpush3.bf16.msra.mxu1 %v4206_v15  ;;  %3611 = vmatpush3.bf16.msra.mxu0 %v4207_v16 }
 0x26d   :  { %3590 = vmatprep.subr.bf16.mxu1 %v4208_v17  ;;  %3612 = vmatprep.subr.bf16.mxu0 %v4209_v18 }
 0x270   :  { %3591 = vmatpush3.bf16.msra.mxu1 %v4210_v19  ;;  %3613 = vmatpush3.bf16.msra.mxu0 %v4211_v20 }
 0x271   :  { %3592 = vmatprep.subr.bf16.mxu1 %v4212_v22  ;;  %3614 = vmatprep.subr.bf16.mxu0 %v4213_v24 }
 0x274   :  { %3593 = vmatpush3.bf16.msra.mxu1 %v4214_v25  ;;  %3615 = vmatpush3.bf16.msra.mxu0 %v4215_v26 }
 0x275   :  { %3594 = vmatprep.subr.bf16.mxu1 %v4216_v27  ;;  %3616 = vmatprep.subr.bf16.mxu0 %v4217_v28 }
 0x278   :  { %3595 = vmatpush3.bf16.msra.mxu1 %v4218_v29  ;;  %3617 = vmatpush3.bf16.msra.mxu0 %v4219_v30 }
 0x32e   :  { %v2685_v35 = vpop.f32.mrb[8].mxu1  ;;  %v2890_v36 = vpop.f32.mrb[12].mxu0 }
 0x32f   :  { %v3638_v37 = vadd.f32 %v2685_v35, %v1030_v32  ;;  %v3640_v23 = vadd.f32 %v2890_v36, %v1038_v33  ;;  %v2687_v38 = vpop.f32.mrb[9].mxu1  ;;  %v2892_v40 = vpop.f32.mrb[13].mxu0 }
 0x330   :  { %v3639_v0 = vadd.f32 %v2687_v38, %v1034_v4  ;;  %v3641_v41 = vadd.f32 %v2892_v40, %v1042_v34  ;;  %v2689_v43 = vpop.f32.mrb[10].mxu1  ;;  %v2894_v44 = vpop.f32.mrb[14].mxu0 }
 0x331   :  { %4238 = vtanh.f32 %v3638_v37  ;;  %v2690_v54 = vpop.f32.mrb[11].mxu1  ;;  %v2895_v45 = vpop.f32.mrb[15].mxu0 }
 0x332   :  { %4240 = vtanh.f32 %v3640_v23 }
 0x333   :  { %4242 = vtanh.f32 %v3639_v0 }
 0x334   :  { %4244 = vtanh.f32 %v3641_v41 }
 0x33b   :  { %v4239_v56 = vpop.eup %4238 }
 0x33c   :  { %v4241_v10 = vpop.eup %4240  ;;  %v2901_v47 = vpack.c.bf16 %v4239_v56, %v4239_v56 }
 0x33d   :  { %v4243_v53 = vpop.eup %4242  ;;  %v2903_v51 = vpack.c.bf16 %v4241_v10, %v4241_v10 }
 0x33e   :  { %v4245_v62 = vpop.eup %4244  ;;  %v2902_v46 = vpack.c.bf16 %v4243_v53, %v4243_v53 }
 0x33f   :  { %v2904_v48 = vpack.c.bf16 %v4245_v62, %v4245_v62 }
 0x340   :  { %3135 = vmatprep.mubr.bf16.mxu1 %v2902_v46 }
 0x341   :  { %3175 = vmatprep.mubr.bf16.mxu0 %v2904_v48  ;;  %3136 = vmatmul.mubr.bf16.vlgmr.msra.gmra.mrb[12].mxu1 %v2901_v47 }
 0x342   :  { %3176 = vmatmul.mubr.bf16.vlgmr.msra.gmra.mrb[16].mxu0 %v2903_v51 }
 0x414   :  { %v3596_v49 = vpop.f32.mrb[12].mxu1 }
 0x415   :  { %v3618_v50 = vpop.f32.mrb[16].mxu0  ;;  %v3597_v57 = vpop.f32.mrb[13].mxu1 }
 0x416   :  { %v3598_v58 = vadd.f32 %v3597_v57, %v3596_v49  ;;  %v3619_v59 = vpop.f32.mrb[17].mxu0  ;;  %v3599_v21 = vpop.f32.mrb[14].mxu1 }
 0x417   :  { %v3620_v60 = vadd.f32 %v3619_v59, %v3618_v50  ;;  %v3621_v61 = vpop.f32.mrb[18].mxu0  ;;  %v3600_v63 = vpop.f32.mrb[15].mxu1 }
 0x418   :  { %v3138_v1 = vadd.f32 %v3598_v58, %v3541_v52  ;;  %v3622_v42 = vpop.f32.mrb[19].mxu0 }
 0x41a   :  { %v3178_v2 = vadd.f32 %v3620_v60, %v3138_v1 }
 0x41c   :  { %3183 = vst [vmem:[#allocation14] sm:$0xff] %v3178_v2 }
 0x41d   :  { %4411 = shalt.err (!%p4408_p4)
}
 0x41e   :  { %s4412_s16 = scalar_lea.hbm %s4664_s7, 128 }
 0x41f   :  { %p4413_p5 = scmp.ne.s32.totalorder %s4664_s7, %s4412_s16  ;;  %p4416_p6 = scmp.lt.u32.totalorder %s4412_s16, %s4664_s7 }
 0x421   :  { %p4418_p7 = pnand %p4416_p6, %p4413_p5 }
 0x423   :  { %4421 = shalt.err (!%p4418_p7)
}
 0x424   :  { %3193 = dma.vmem_to_hbm [thread:$0]  %s3191_s14, 128, %s4664_s7, [#allocation4]  }
 0x425   :  { %4430 = dma.done.wait [#allocation4], 128  }
 0x426   :  { %4431 = vsyncadd [#allocation4], 4294967168 }
 0x427   :  { %3197 = vsyncpa [#allocation3], 1 }
 0x428   :  { %3198 = vsyncpa [#allocation6], 1 }
 0x429   :  { %3199 = vsyncpa [#allocation9], 1 }
 0x42a   :  { %3200 = vsyncpa [#allocation12], 1 }
 0x42b   :  { %3201 = vsyncpa [#allocation4], 1 }

</bundles_post_ra>
